<compile_context>
chip_gen: v7x
topology: tpu7x:2x2x1
jax: 0.10.0
libtpu: 0.0.40
codegen_flags: <defaults>
</compile_context>

<pallas_src>
import jax
import jax.numpy as jnp
from jax.experimental import pallas as pl
from jax.experimental.pallas import tpu as pltpu

# ----------------------------- config (small, deterministic) -----------------
B = 2            # batch
C = 4            # input channels
IMG = 16         # image height/width
P = 8            # patch size
D = 32           # embed dim
H = 4            # num heads
DH = D // H      # head dim
MLP_DIM = 64     # mlp hidden dim
N_BLOCKS = 2     # transformer blocks
NUM_CLASSES = 8
GH = IMG // P
N_PATCH = GH * GH
N = N_PATCH + 1  # tokens incl. cls
CPP = C * P * P
EPS = 1e-6
SCALE = DH ** -0.5
GELU_K = 0.7071067811865476


def _ln(v, gamma, beta):
    mu = jnp.mean(v, axis=-1, keepdims=True)
    vc = v - mu
    var = jnp.mean(vc * vc, axis=-1, keepdims=True)
    return vc * jax.lax.rsqrt(var + EPS) * gamma + beta


# ----------------------------- fused ViT kernel ------------------------------
def _vit_kernel(
    # inputs (constant-index unless stacked per block)
    patches_ref, pw_ref, pb_ref, cls_ref, pos_ref,
    ln1_g_ref, ln1_b_ref, qkv_w_ref, qkv_b_ref, proj_w_ref, proj_b_ref,
    ln2_g_ref, ln2_b_ref, fc1_w_ref, fc1_b_ref, fc2_w_ref, fc2_b_ref,
    norm_g_ref, norm_b_ref, head_w_ref, head_b_ref,
    # outputs (hooked intermediates)
    x0_ref, z1_ref, z2_ref, ctx_ref, attn_ref, out_ref,
    # scratch: residual stream, resident in VMEM across all blocks
    x_scr,
):
    i = pl.program_id(0)

    # ---- patch embed + cls token + pos embed, only at the first block ----
    @pl.when(i == 0)
    def _embed():
        pe = jnp.dot(patches_ref[...], pw_ref[...],
                     preferred_element_type=jnp.float32) + pb_ref[...]   # (B*NP, D)
        for b in range(B):
            x_scr[b * N:b * N + 1, :] = cls_ref[...] + pos_ref[0:1, :]
            x_scr[b * N + 1:(b + 1) * N, :] = (
                pe[b * N_PATCH:(b + 1) * N_PATCH, :] + pos_ref[1:N, :]
            )
        x0_ref[...] = x_scr[...]          # zs[0]: blocks.0 input

    x = x_scr[...]                        # (B*N, D)

    # ---- attention branch: LN1 -> QKV -> per-head softmax attn -> proj ----
    h1 = _ln(x, ln1_g_ref[0], ln1_b_ref[0])
    qkv = (jnp.dot(h1, qkv_w_ref[0], preferred_element_type=jnp.float32)
           + qkv_b_ref[0])                # (B*N, 3D); layout [q | k | v], heads inside

    for b in range(B):
        rows = slice(b * N, (b + 1) * N)
        for h in range(H):
            q = qkv[rows, h * DH:(h + 1) * DH] * SCALE
            k = qkv[rows, D + h * DH:D + (h + 1) * DH]
            v = qkv[rows, 2 * D + h * DH:2 * D + (h + 1) * DH]
            s = jax.lax.dot_general(q, k, (((1,), (1,)), ((), ())),
                                    preferred_element_type=jnp.float32)   # (N, N)
            m = jnp.max(s, axis=-1, keepdims=True)
            e = jnp.exp(s - m)
            p = e * pl.reciprocal(jnp.sum(e, axis=-1, keepdims=True), approx=True)
            attn_ref[0, b * H + h] = p                                    # attn_drop out
            ctx_ref[0, rows, h * DH:(h + 1) * DH] = jnp.dot(
                p, v, preferred_element_type=jnp.float32)

    ctx = ctx_ref[0]                      # (B*N, D) lane-dense == attn.proj input
    attn_out = (jnp.dot(ctx, proj_w_ref[0], preferred_element_type=jnp.float32)
                + proj_b_ref[0])
    x1 = x + attn_out                     # z1 = norm2 input
    z1_ref[0] = x1

    # ---- MLP branch: LN2 -> fc1 -> GELU -> fc2 -> residual ----
    h2 = _ln(x1, ln2_g_ref[0], ln2_b_ref[0])
    hh = (jnp.dot(h2, fc1_w_ref[0], preferred_element_type=jnp.float32)
          + fc1_b_ref[0])
    hh = 0.5 * hh * (1.0 + jax.lax.erf(hh * GELU_K))      # exact GELU (torch default)
    mlp_out = (jnp.dot(hh, fc2_w_ref[0], preferred_element_type=jnp.float32)
               + fc2_b_ref[0])
    x2 = x1 + mlp_out                     # z2 = z1 + mlp_out
    z2_ref[0] = x2
    x_scr[...] = x2                       # carry residual stream to next block

    # ---- final norm + cls-token head, only at the last block ----
    @pl.when(i == pl.num_programs(0) - 1)
    def _head():
        xn = _ln(x2, norm_g_ref[...], norm_b_ref[...])
        logits = (jnp.dot(xn, head_w_ref[...], preferred_element_type=jnp.float32)
                  + head_b_ref[...])
        for b in range(B):
            out_ref[b:b + 1, :] = logits[b * N:b * N + 1, :]


# ----------------------------- parameter init --------------------------------
def init_params(key):
    def nrm(k, shape, scale=0.02):
        return (scale * jax.random.normal(k, shape)).astype(jnp.float32)

    keys = iter(jax.random.split(key, 8 + N_BLOCKS * 12))
    params = {
        "patch_w": nrm(next(keys), (CPP, D)),      # conv weight flattened (in, out)
        "patch_b": nrm(next(keys), (D,)),
        "cls_token": nrm(next(keys), (1, 1, D)),
        "pos_embed": nrm(next(keys), (1, N, D)),
        "norm_g": jnp.ones((D,), jnp.float32),
        "norm_b": jnp.zeros((D,), jnp.float32),
        "head_w": nrm(next(keys), (D, NUM_CLASSES)),
        "head_b": nrm(next(keys), (NUM_CLASSES,)),
        "blocks": [],
    }
    for _ in range(N_BLOCKS):
        blk = {
            "ln1_g": jnp.ones((D,), jnp.float32),
            "ln1_b": jnp.zeros((D,), jnp.float32),
            "qkv_w": nrm(next(keys), (D, 3 * D)),
            "qkv_b": nrm(next(keys), (3 * D,)),
            "proj_w": nrm(next(keys), (D, D)),
            "proj_b": nrm(next(keys), (D,)),
            "ln2_g": jnp.ones((D,), jnp.float32),
            "ln2_b": jnp.zeros((D,), jnp.float32),
            "fc1_w": nrm(next(keys), (D, MLP_DIM)),
            "fc1_b": nrm(next(keys), (MLP_DIM,)),
            "fc2_w": nrm(next(keys), (MLP_DIM, D)),
            "fc2_b": nrm(next(keys), (D,)),
        }
        params["blocks"].append(blk)
    return params


def _stack(blocks, key, as_row=False):
    if as_row:
        return jnp.stack([blk[key].reshape(1, -1) for blk in blocks])   # (NB, 1, d)
    return jnp.stack([blk[key] for blk in blocks])                      # (NB, d_in, d_out)


# ----------------------------- forward pass ----------------------------------
def hooked_vit_forward(x_nchw, params):
    bsz, c, h_img, w_img = x_nchw.shape
    assert (bsz, c, h_img, w_img) == (B, C, IMG, IMG)
    gh, gw = h_img // P, w_img // P

    # patch-extract (conv k=stride=P == patch reshape + matmul); pure layout glue
    patches = (
        x_nchw.reshape(bsz, c, gh, P, gw, P)
        .transpose(0, 2, 4, 1, 3, 5)
        .reshape(bsz * gh * gw, c * P * P)
    )

    blocks = params["blocks"]
    const2d = lambda shape: pl.BlockSpec(shape, lambda i: (0, 0))
    blk3d = lambda shape: pl.BlockSpec((1,) + shape, lambda i: (i, 0, 0))

    in_specs = [
        const2d((B * N_PATCH, CPP)),              # patches
        const2d((CPP, D)),                        # patch_w
        const2d((1, D)),                          # patch_b
        const2d((1, D)),                          # cls_token
        const2d((N, D)),                          # pos_embed
        blk3d((1, D)), blk3d((1, D)),             # ln1 g / b
        blk3d((D, 3 * D)), blk3d((1, 3 * D)),     # qkv w / b
        blk3d((D, D)), blk3d((1, D)),             # proj w / b
        blk3d((1, D)), blk3d((1, D)),             # ln2 g / b
        blk3d((D, MLP_DIM)), blk3d((1, MLP_DIM)), # fc1 w / b
        blk3d((MLP_DIM, D)), blk3d((1, D)),       # fc2 w / b
        const2d((1, D)), const2d((1, D)),         # norm g / b
        const2d((D, NUM_CLASSES)), const2d((1, NUM_CLASSES)),  # head w / b
    ]
    out_specs = (
        const2d((B * N, D)),                                     # x0 (blocks.0 input)
        pl.BlockSpec((1, B * N, D), lambda i: (i, 0, 0)),        # z1 per block
        pl.BlockSpec((1, B * N, D), lambda i: (i, 0, 0)),        # z2 per block
        pl.BlockSpec((1, B * N, D), lambda i: (i, 0, 0)),        # ctx (proj input)
        pl.BlockSpec((1, B * H, N, N), lambda i: (i, 0, 0, 0)),  # attn maps
        const2d((B, NUM_CLASSES)),                               # logits
    )
    out_shape = (
        jax.ShapeDtypeStruct((B * N, D), jnp.float32),
        jax.ShapeDtypeStruct((N_BLOCKS, B * N, D), jnp.float32),
        jax.ShapeDtypeStruct((N_BLOCKS, B * N, D), jnp.float32),
        jax.ShapeDtypeStruct((N_BLOCKS, B * N, D), jnp.float32),
        jax.ShapeDtypeStruct((N_BLOCKS, B * H, N, N), jnp.float32),
        jax.ShapeDtypeStruct((B, NUM_CLASSES), jnp.float32),
    )

    x0, z1s, z2s, ctxs, attns, out = pl.pallas_call(
        _vit_kernel,
        grid=(N_BLOCKS,),
        in_specs=in_specs,
        out_specs=out_specs,
        out_shape=out_shape,
        scratch_shapes=[pltpu.VMEM((B * N, D), jnp.float32)],
        compiler_params=pltpu.CompilerParams(
            dimension_semantics=("arbitrary",)),    # block i+1 depends on block i
    )(
        patches,
        params["patch_w"], params["patch_b"].reshape(1, D),
        params["cls_token"].reshape(1, D), params["pos_embed"].reshape(N, D),
        _stack(blocks, "ln1_g", True), _stack(blocks, "ln1_b", True),
        _stack(blocks, "qkv_w"), _stack(blocks, "qkv_b", True),
        _stack(blocks, "proj_w"), _stack(blocks, "proj_b", True),
        _stack(blocks, "ln2_g", True), _stack(blocks, "ln2_b", True),
        _stack(blocks, "fc1_w"), _stack(blocks, "fc1_b", True),
        _stack(blocks, "fc2_w"), _stack(blocks, "fc2_b", True),
        params["norm_g"].reshape(1, D), params["norm_b"].reshape(1, D),
        params["head_w"], params["head_b"].reshape(1, NUM_CLASSES),
    )

    # assemble hook outputs (pure layout glue, outside the kernel)
    zs = [x0.reshape(B, N, D)]
    for blk_idx in range(N_BLOCKS):
        zs.append(z1s[blk_idx].reshape(B, N, D))
        zs.append(z2s[blk_idx].reshape(B, N, D))
    zs.append(out)

    attn_fts = ctxs.reshape(N_BLOCKS, B, N, H, DH).transpose(0, 1, 3, 2, 4)
    attn_maps = attns.reshape(N_BLOCKS, B, H, N, N)

    return {
        "attn_fts": attn_fts,   # (n_blocks, B, H, N, DH)
        "attns": attn_maps,     # (n_blocks, B, H, N, N)
        "zs": zs,               # mirrors HookedViT.get_zs()
        "out": out,             # (B, NUM_CLASSES)
    }
    # TODO(synk): the PyTorch hook/caching machinery (register_forward_hook,
    # clean_tensor .detach().cpu()) has no device-compute equivalent; the hooked
    # intermediates are returned explicitly as kernel outputs instead.


# ----------------------------- main -------------------------------------------
if __name__ == "__main__":
    key = jax.random.PRNGKey(0)
    kx, kp = jax.random.split(key)
    x = jax.random.normal(kx, (B, C, IMG, IMG), dtype=jnp.float32)  # NCHW
    params = init_params(kp)

    result = hooked_vit_forward(x, params)
    jax.block_until_ready(jax.tree_util.tree_leaves(result))

    assert result["attn_fts"].shape == (N_BLOCKS, B, H, N, DH)
    assert result["attns"].shape == (N_BLOCKS, B, H, N, N)
    assert result["out"].shape == (B, NUM_CLASSES)
    assert len(result["zs"]) == 1 + 2 * N_BLOCKS + 1
    print("KERNEL_OK")
</pallas_src>

<mosaic_0001>
module attributes {stable_mosaic.version = 11 : i64} {
  func.func @_vit_kernel(%arg0: i32, %arg1: memref<8x256xf32, #tpu.memory_space<vmem>>, %arg2: memref<256x32xf32, #tpu.memory_space<vmem>>, %arg3: memref<1x32xf32, #tpu.memory_space<vmem>>, %arg4: memref<1x32xf32, #tpu.memory_space<vmem>>, %arg5: memref<5x32xf32, #tpu.memory_space<vmem>>, %arg6: memref<1x1x32xf32, #tpu.memory_space<vmem>>, %arg7: memref<1x1x32xf32, #tpu.memory_space<vmem>>, %arg8: memref<1x32x96xf32, #tpu.memory_space<vmem>>, %arg9: memref<1x1x96xf32, #tpu.memory_space<vmem>>, %arg10: memref<1x32x32xf32, #tpu.memory_space<vmem>>, %arg11: memref<1x1x32xf32, #tpu.memory_space<vmem>>, %arg12: memref<1x1x32xf32, #tpu.memory_space<vmem>>, %arg13: memref<1x1x32xf32, #tpu.memory_space<vmem>>, %arg14: memref<1x32x64xf32, #tpu.memory_space<vmem>>, %arg15: memref<1x1x64xf32, #tpu.memory_space<vmem>>, %arg16: memref<1x64x32xf32, #tpu.memory_space<vmem>>, %arg17: memref<1x1x32xf32, #tpu.memory_space<vmem>>, %arg18: memref<1x32xf32, #tpu.memory_space<vmem>>, %arg19: memref<1x32xf32, #tpu.memory_space<vmem>>, %arg20: memref<32x8xf32, #tpu.memory_space<vmem>>, %arg21: memref<1x8xf32, #tpu.memory_space<vmem>>, %arg22: memref<10x32xf32, #tpu.memory_space<vmem>>, %arg23: memref<1x10x32xf32, #tpu.memory_space<vmem>>, %arg24: memref<1x10x32xf32, #tpu.memory_space<vmem>>, %arg25: memref<1x10x32xf32, #tpu.memory_space<vmem>>, %arg26: memref<1x8x5x5xf32, #tpu.memory_space<vmem>>, %arg27: memref<2x8xf32, #tpu.memory_space<vmem>>, %arg28: memref<10x32xf32, #tpu.memory_space<vmem>>) attributes {dimension_semantics = [#tpu.dimension_semantics<arbitrary>], iteration_bounds = array<i64: 2>, scalar_prefetch = 0 : i64, scratch_operands = 1 : i64, tpu.core_type = #tpu.core_type<tc>, window_params = [{pipeline_mode = #tpu.pipeline_mode<synchronous>, transform_indices = @transform_0, window_bounds = array<i64: 8, 256>}, {pipeline_mode = #tpu.pipeline_mode<synchronous>, transform_indices = @transform_1, window_bounds = array<i64: 256, 32>}, {pipeline_mode = #tpu.pipeline_mode<synchronous>, transform_indices = @transform_2, window_bounds = array<i64: 1, 32>}, {pipeline_mode = #tpu.pipeline_mode<synchronous>, transform_indices = @transform_3, window_bounds = array<i64: 1, 32>}, {pipeline_mode = #tpu.pipeline_mode<synchronous>, transform_indices = @transform_4, window_bounds = array<i64: 5, 32>}, {transform_indices = @transform_5, window_bounds = array<i64: 1, 1, 32>}, {transform_indices = @transform_6, window_bounds = array<i64: 1, 1, 32>}, {transform_indices = @transform_7, window_bounds = array<i64: 1, 32, 96>}, {transform_indices = @transform_8, window_bounds = array<i64: 1, 1, 96>}, {transform_indices = @transform_9, window_bounds = array<i64: 1, 32, 32>}, {transform_indices = @transform_10, window_bounds = array<i64: 1, 1, 32>}, {transform_indices = @transform_11, window_bounds = array<i64: 1, 1, 32>}, {transform_indices = @transform_12, window_bounds = array<i64: 1, 1, 32>}, {transform_indices = @transform_13, window_bounds = array<i64: 1, 32, 64>}, {transform_indices = @transform_14, window_bounds = array<i64: 1, 1, 64>}, {transform_indices = @transform_15, window_bounds = array<i64: 1, 64, 32>}, {transform_indices = @transform_16, window_bounds = array<i64: 1, 1, 32>}, {pipeline_mode = #tpu.pipeline_mode<synchronous>, transform_indices = @transform_17, window_bounds = array<i64: 1, 32>}, {pipeline_mode = #tpu.pipeline_mode<synchronous>, transform_indices = @transform_18, window_bounds = array<i64: 1, 32>}, {pipeline_mode = #tpu.pipeline_mode<synchronous>, transform_indices = @transform_19, window_bounds = array<i64: 32, 8>}, {pipeline_mode = #tpu.pipeline_mode<synchronous>, transform_indices = @transform_20, window_bounds = array<i64: 1, 8>}, {pipeline_mode = #tpu.pipeline_mode<synchronous>, transform_indices = @transform_21, window_bounds = array<i64: 10, 32>}, {transform_indices = @transform_22, window_bounds = array<i64: 1, 10, 32>}, {transform_indices = @transform_23, window_bounds = array<i64: 1, 10, 32>}, {transform_indices = @transform_24, window_bounds = array<i64: 1, 10, 32>}, {transform_indices = @transform_25, window_bounds = array<i64: 1, 8, 5, 5>}, {pipeline_mode = #tpu.pipeline_mode<synchronous>, transform_indices = @transform_26, window_bounds = array<i64: 2, 8>}]} {
    %c0_i32 = arith.constant 0 : i32
    %0 = arith.cmpi eq, %arg0, %c0_i32 : i32
    %1 = arith.extui %0 : i1 to i32
    %c0_i32_0 = arith.constant 0 : i32
    %2 = arith.cmpi ne, %1, %c0_i32_0 : i32
    scf.if %2 {
      %c0_152 = arith.constant 0 : index
      %c0_153 = arith.constant 0 : index
      %286 = vector.load %arg1[%c0_152, %c0_153] : memref<8x256xf32, #tpu.memory_space<vmem>>, vector<8x256xf32>
      %c0_154 = arith.constant 0 : index
      %c0_155 = arith.constant 0 : index
      %287 = vector.load %arg2[%c0_154, %c0_155] : memref<256x32xf32, #tpu.memory_space<vmem>>, vector<256x32xf32>
      %cst_156 = arith.constant dense<0.000000e+00> : vector<8x32xf32>
      %288 = tpu.matmul %286, %287, %cst_156 {dimension_numbers = #tpu.dot_dimension_numbers<[1], [0], [0], [1], [0, 0, 1, 1], [], []>} : vector<8x256xf32>, vector<256x32xf32>, vector<8x32xf32> -> vector<8x32xf32>
      %c0_157 = arith.constant 0 : index
      %c0_158 = arith.constant 0 : index
      %289 = vector.load %arg3[%c0_157, %c0_158] : memref<1x32xf32, #tpu.memory_space<vmem>>, vector<1x32xf32>
      %290 = vector.broadcast %289 : vector<1x32xf32> to vector<8x32xf32>
      %291 = arith.addf %288, %290 : vector<8x32xf32>
      %c0_159 = arith.constant 0 : index
      %c0_160 = arith.constant 0 : index
      %292 = vector.load %arg4[%c0_159, %c0_160] : memref<1x32xf32, #tpu.memory_space<vmem>>, vector<1x32xf32>
      %c0_161 = arith.constant 0 : index
      %c0_162 = arith.constant 0 : index
      %293 = vector.load %arg5[%c0_161, %c0_162] : memref<5x32xf32, #tpu.memory_space<vmem>>, vector<1x32xf32>
      %294 = arith.addf %292, %293 : vector<1x32xf32>
      %c0_163 = arith.constant 0 : index
      %c0_164 = arith.constant 0 : index
      %295 = vector.load %arg28[%c0_163, %c0_164] : memref<10x32xf32, #tpu.memory_space<vmem>>, vector<1x32xf32>
      tpu.vector_store %arg28[%c0_163, %c0_164], %294 {strides = array<i32>} : memref<10x32xf32, #tpu.memory_space<vmem>>, vector<1x32xf32>,
      %296 = vector.extract_strided_slice %291 {offsets = [0, 0], sizes = [4, 32], strides = [1, 1]} : vector<8x32xf32> to vector<4x32xf32>
      %c1_165 = arith.constant 1 : index
      %c0_166 = arith.constant 0 : index
      %297 = vector.load %arg5[%c1_165, %c0_166] : memref<5x32xf32, #tpu.memory_space<vmem>>, vector<4x32xf32>
      %298 = arith.addf %296, %297 : vector<4x32xf32>
      %c1_167 = arith.constant 1 : index
      %c0_168 = arith.constant 0 : index
      %299 = vector.load %arg28[%c1_167, %c0_168] : memref<10x32xf32, #tpu.memory_space<vmem>>, vector<4x32xf32>
      tpu.vector_store %arg28[%c1_167, %c0_168], %298 {strides = array<i32>} : memref<10x32xf32, #tpu.memory_space<vmem>>, vector<4x32xf32>,
      %c0_169 = arith.constant 0 : index
      %c0_170 = arith.constant 0 : index
      %300 = vector.load %arg4[%c0_169, %c0_170] : memref<1x32xf32, #tpu.memory_space<vmem>>, vector<1x32xf32>
      %c0_171 = arith.constant 0 : index
      %c0_172 = arith.constant 0 : index
      %301 = vector.load %arg5[%c0_171, %c0_172] : memref<5x32xf32, #tpu.memory_space<vmem>>, vector<1x32xf32>
      %302 = arith.addf %300, %301 : vector<1x32xf32>
      %c5_173 = arith.constant 5 : index
      %c0_174 = arith.constant 0 : index
      %303 = vector.load %arg28[%c5_173, %c0_174] : memref<10x32xf32, #tpu.memory_space<vmem>>, vector<1x32xf32>
      tpu.vector_store %arg28[%c5_173, %c0_174], %302 {strides = array<i32>} : memref<10x32xf32, #tpu.memory_space<vmem>>, vector<1x32xf32>,
      %304 = vector.extract_strided_slice %291 {offsets = [4, 0], sizes = [4, 32], strides = [1, 1]} : vector<8x32xf32> to vector<4x32xf32>
      %c1_175 = arith.constant 1 : index
      %c0_176 = arith.constant 0 : index
      %305 = vector.load %arg5[%c1_175, %c0_176] : memref<5x32xf32, #tpu.memory_space<vmem>>, vector<4x32xf32>
      %306 = arith.addf %304, %305 : vector<4x32xf32>
      %c6_177 = arith.constant 6 : index
      %c0_178 = arith.constant 0 : index
      %307 = vector.load %arg28[%c6_177, %c0_178] : memref<10x32xf32, #tpu.memory_space<vmem>>, vector<4x32xf32>
      tpu.vector_store %arg28[%c6_177, %c0_178], %306 {strides = array<i32>} : memref<10x32xf32, #tpu.memory_space<vmem>>, vector<4x32xf32>,
      %c0_179 = arith.constant 0 : index
      %c0_180 = arith.constant 0 : index
      %308 = vector.load %arg28[%c0_179, %c0_180] : memref<10x32xf32, #tpu.memory_space<vmem>>, vector<10x32xf32>
      %c0_181 = arith.constant 0 : index
      %c0_182 = arith.constant 0 : index
      %309 = vector.load %arg22[%c0_181, %c0_182] : memref<10x32xf32, #tpu.memory_space<vmem>>, vector<10x32xf32>
      tpu.vector_store %arg22[%c0_181, %c0_182], %308 {strides = array<i32>} : memref<10x32xf32, #tpu.memory_space<vmem>>, vector<10x32xf32>,
    } else {
    }
    %c0 = arith.constant 0 : index
    %c0_1 = arith.constant 0 : index
    %3 = vector.load %arg28[%c0, %c0_1] : memref<10x32xf32, #tpu.memory_space<vmem>>, vector<10x32xf32>
    %c0_2 = arith.constant 0 : index
    %c0_3 = arith.constant 0 : index
    %c0_4 = arith.constant 0 : index
    %4 = vector.load %arg6[%c0_2, %c0_3, %c0_4] : memref<1x1x32xf32, #tpu.memory_space<vmem>>, vector<1x1x32xf32>
    %5 = vector.shape_cast %4 : vector<1x1x32xf32> to vector<1x32xf32>
    %c0_5 = arith.constant 0 : index
    %c0_6 = arith.constant 0 : index
    %c0_7 = arith.constant 0 : index
    %6 = vector.load %arg7[%c0_5, %c0_6, %c0_7] : memref<1x1x32xf32, #tpu.memory_space<vmem>>, vector<1x1x32xf32>
    %7 = vector.shape_cast %6 : vector<1x1x32xf32> to vector<1x32xf32>
    %cst = arith.constant dense<0.000000e+00> : vector<10xf32>
    %8 = vector.multi_reduction <add>, %3, %cst [1] : vector<10x32xf32> to vector<10xf32>
    %9 = vector.shape_cast %8 : vector<10xf32> to vector<10x1xf32>
    %cst_8 = arith.constant 3.200000e+01 : f32
    %10 = vector.broadcast %cst_8 : f32 to vector<10x1xf32>
    %11 = arith.divf %9, %10 : vector<10x1xf32>
    %12 = vector.broadcast %11 : vector<10x1xf32> to vector<10x32xf32>
    %13 = arith.subf %3, %12 : vector<10x32xf32>
    %14 = arith.mulf %13, %13 : vector<10x32xf32>
    %cst_9 = arith.constant dense<0.000000e+00> : vector<10xf32>
    %15 = vector.multi_reduction <add>, %14, %cst_9 [1] : vector<10x32xf32> to vector<10xf32>
    %16 = vector.shape_cast %15 : vector<10xf32> to vector<10x1xf32>
    %cst_10 = arith.constant 3.200000e+01 : f32
    %17 = vector.broadcast %cst_10 : f32 to vector<10x1xf32>
    %18 = arith.divf %16, %17 : vector<10x1xf32>
    %cst_11 = arith.constant 9.99999997E-7 : f32
    %19 = vector.broadcast %cst_11 : f32 to vector<10x1xf32>
    %20 = arith.addf %18, %19 : vector<10x1xf32>
    %21 = math.rsqrt %20 : vector<10x1xf32>
    %22 = vector.broadcast %21 : vector<10x1xf32> to vector<10x32xf32>
    %23 = arith.mulf %13, %22 : vector<10x32xf32>
    %24 = vector.broadcast %5 : vector<1x32xf32> to vector<10x32xf32>
    %25 = arith.mulf %23, %24 : vector<10x32xf32>
    %26 = vector.broadcast %7 : vector<1x32xf32> to vector<10x32xf32>
    %27 = arith.addf %25, %26 : vector<10x32xf32>
    %c0_12 = arith.constant 0 : index
    %c0_13 = arith.constant 0 : index
    %c0_14 = arith.constant 0 : index
    %28 = vector.load %arg8[%c0_12, %c0_13, %c0_14] : memref<1x32x96xf32, #tpu.memory_space<vmem>>, vector<1x32x96xf32>
    %29 = vector.shape_cast %28 : vector<1x32x96xf32> to vector<32x96xf32>
    %cst_15 = arith.constant dense<0.000000e+00> : vector<10x96xf32>
    %30 = tpu.matmul %27, %29, %cst_15 {dimension_numbers = #tpu.dot_dimension_numbers<[1], [0], [0], [1], [0, 0, 1, 1], [], []>} : vector<10x32xf32>, vector<32x96xf32>, vector<10x96xf32> -> vector<10x96xf32>
    %c0_16 = arith.constant 0 : index
    %c0_17 = arith.constant 0 : index
    %c0_18 = arith.constant 0 : index
    %31 = vector.load %arg9[%c0_16, %c0_17, %c0_18] : memref<1x1x96xf32, #tpu.memory_space<vmem>>, vector<1x1x96xf32>
    %32 = vector.shape_cast %31 : vector<1x1x96xf32> to vector<1x96xf32>
    %33 = vector.broadcast %32 : vector<1x96xf32> to vector<10x96xf32>
    %34 = arith.addf %30, %33 : vector<10x96xf32>
    %35 = vector.extract_strided_slice %34 {offsets = [0, 0], sizes = [5, 8], strides = [1, 1]} : vector<10x96xf32> to vector<5x8xf32>
    %cst_19 = arith.constant 0.353553385 : f32
    %36 = vector.broadcast %cst_19 : f32 to vector<5x8xf32>
    %37 = arith.mulf %35, %36 : vector<5x8xf32>
    %38 = vector.extract_strided_slice %34 {offsets = [0, 32], sizes = [5, 8], strides = [1, 1]} : vector<10x96xf32> to vector<5x8xf32>
    %39 = vector.extract_strided_slice %34 {offsets = [0, 64], sizes = [5, 8], strides = [1, 1]} : vector<10x96xf32> to vector<5x8xf32>
    %cst_20 = arith.constant dense<0.000000e+00> : vector<5x5xf32>
    %40 = tpu.matmul %37, %38, %cst_20 {dimension_numbers = #tpu.dot_dimension_numbers<[1], [1], [0], [0], [0, 0, 1, 0], [], []>} : vector<5x8xf32>, vector<5x8xf32>, vector<5x5xf32> -> vector<5x5xf32>
    %cst_21 = arith.constant dense<0xFF800000> : vector<5xf32>
    %41 = vector.multi_reduction <maximumf>, %40, %cst_21 [1] : vector<5x5xf32> to vector<5xf32>
    %42 = vector.shape_cast %41 : vector<5xf32> to vector<5x1xf32>
    %43 = vector.broadcast %42 : vector<5x1xf32> to vector<5x5xf32>
    %44 = arith.subf %40, %43 : vector<5x5xf32>
    %45 = math.exp %44 : vector<5x5xf32>
    %cst_22 = arith.constant dense<0.000000e+00> : vector<5xf32>
    %46 = vector.multi_reduction <add>, %45, %cst_22 [1] : vector<5x5xf32> to vector<5xf32>
    %47 = vector.shape_cast %46 : vector<5xf32> to vector<5x1xf32>
    %48 = tpu.reciprocal %47 {approx = true} : vector<5x1xf32> -> vector<5x1xf32>
    %49 = vector.broadcast %48 : vector<5x1xf32> to vector<5x5xf32>
    %50 = arith.mulf %45, %49 : vector<5x5xf32>
    %c0_23 = arith.constant 0 : index
    %c0_24 = arith.constant 0 : index
    %c0_25 = arith.constant 0 : index
    %c0_26 = arith.constant 0 : index
    %51 = vector.load %arg26[%c0_23, %c0_24, %c0_25, %c0_26] : memref<1x8x5x5xf32, #tpu.memory_space<vmem>>, vector<1x1x5x5xf32>
    %52 = vector.shape_cast %51 : vector<1x1x5x5xf32> to vector<5x5xf32>
    %53 = vector.shape_cast %50 : vector<5x5xf32> to vector<1x1x5x5xf32>
    tpu.vector_store %arg26[%c0_23, %c0_24, %c0_25, %c0_26], %53 {strides = array<i32>} : memref<1x8x5x5xf32, #tpu.memory_space<vmem>>, vector<1x1x5x5xf32>,
    %cst_27 = arith.constant dense<0.000000e+00> : vector<5x8xf32>
    %54 = tpu.matmul %50, %39, %cst_27 {dimension_numbers = #tpu.dot_dimension_numbers<[1], [0], [0], [1], [0, 0, 1, 1], [], []>} : vector<5x5xf32>, vector<5x8xf32>, vector<5x8xf32> -> vector<5x8xf32>
    %c0_28 = arith.constant 0 : index
    %c0_29 = arith.constant 0 : index
    %c0_30 = arith.constant 0 : index
    %55 = vector.load %arg25[%c0_28, %c0_29, %c0_30] : memref<1x10x32xf32, #tpu.memory_space<vmem>>, vector<1x5x8xf32>
    %56 = vector.shape_cast %55 : vector<1x5x8xf32> to vector<5x8xf32>
    %57 = vector.shape_cast %54 : vector<5x8xf32> to vector<1x5x8xf32>
    tpu.vector_store %arg25[%c0_28, %c0_29, %c0_30], %57 {strides = array<i32>} : memref<1x10x32xf32, #tpu.memory_space<vmem>>, vector<1x5x8xf32>,
    %58 = vector.extract_strided_slice %34 {offsets = [0, 8], sizes = [5, 8], strides = [1, 1]} : vector<10x96xf32> to vector<5x8xf32>
    %cst_31 = arith.constant 0.353553385 : f32
    %59 = vector.broadcast %cst_31 : f32 to vector<5x8xf32>
    %60 = arith.mulf %58, %59 : vector<5x8xf32>
    %61 = vector.extract_strided_slice %34 {offsets = [0, 40], sizes = [5, 8], strides = [1, 1]} : vector<10x96xf32> to vector<5x8xf32>
    %62 = vector.extract_strided_slice %34 {offsets = [0, 72], sizes = [5, 8], strides = [1, 1]} : vector<10x96xf32> to vector<5x8xf32>
    %cst_32 = arith.constant dense<0.000000e+00> : vector<5x5xf32>
    %63 = tpu.matmul %60, %61, %cst_32 {dimension_numbers = #tpu.dot_dimension_numbers<[1], [1], [0], [0], [0, 0, 1, 0], [], []>} : vector<5x8xf32>, vector<5x8xf32>, vector<5x5xf32> -> vector<5x5xf32>
    %cst_33 = arith.constant dense<0xFF800000> : vector<5xf32>
    %64 = vector.multi_reduction <maximumf>, %63, %cst_33 [1] : vector<5x5xf32> to vector<5xf32>
    %65 = vector.shape_cast %64 : vector<5xf32> to vector<5x1xf32>
    %66 = vector.broadcast %65 : vector<5x1xf32> to vector<5x5xf32>
    %67 = arith.subf %63, %66 : vector<5x5xf32>
    %68 = math.exp %67 : vector<5x5xf32>
    %cst_34 = arith.constant dense<0.000000e+00> : vector<5xf32>
    %69 = vector.multi_reduction <add>, %68, %cst_34 [1] : vector<5x5xf32> to vector<5xf32>
    %70 = vector.shape_cast %69 : vector<5xf32> to vector<5x1xf32>
    %71 = tpu.reciprocal %70 {approx = true} : vector<5x1xf32> -> vector<5x1xf32>
    %72 = vector.broadcast %71 : vector<5x1xf32> to vector<5x5xf32>
    %73 = arith.mulf %68, %72 : vector<5x5xf32>
    %c0_35 = arith.constant 0 : index
    %c1 = arith.constant 1 : index
    %c0_36 = arith.constant 0 : index
    %c0_37 = arith.constant 0 : index
    %74 = vector.load %arg26[%c0_35, %c1, %c0_36, %c0_37] : memref<1x8x5x5xf32, #tpu.memory_space<vmem>>, vector<1x1x5x5xf32>
    %75 = vector.shape_cast %74 : vector<1x1x5x5xf32> to vector<5x5xf32>
    %76 = vector.shape_cast %73 : vector<5x5xf32> to vector<1x1x5x5xf32>
    tpu.vector_store %arg26[%c0_35, %c1, %c0_36, %c0_37], %76 {strides = array<i32>} : memref<1x8x5x5xf32, #tpu.memory_space<vmem>>, vector<1x1x5x5xf32>,
    %cst_38 = arith.constant dense<0.000000e+00> : vector<5x8xf32>
    %77 = tpu.matmul %73, %62, %cst_38 {dimension_numbers = #tpu.dot_dimension_numbers<[1], [0], [0], [1], [0, 0, 1, 1], [], []>} : vector<5x5xf32>, vector<5x8xf32>, vector<5x8xf32> -> vector<5x8xf32>
    %c0_39 = arith.constant 0 : index
    %c0_40 = arith.constant 0 : index
    %c8 = arith.constant 8 : index
    %78 = vector.load %arg25[%c0_39, %c0_40, %c8] : memref<1x10x32xf32, #tpu.memory_space<vmem>>, vector<1x5x8xf32>
    %79 = vector.shape_cast %78 : vector<1x5x8xf32> to vector<5x8xf32>
    %80 = vector.shape_cast %77 : vector<5x8xf32> to vector<1x5x8xf32>
    tpu.vector_store %arg25[%c0_39, %c0_40, %c8], %80 {strides = array<i32>} : memref<1x10x32xf32, #tpu.memory_space<vmem>>, vector<1x5x8xf32>,
    %81 = vector.extract_strided_slice %34 {offsets = [0, 16], sizes = [5, 8], strides = [1, 1]} : vector<10x96xf32> to vector<5x8xf32>
    %cst_41 = arith.constant 0.353553385 : f32
    %82 = vector.broadcast %cst_41 : f32 to vector<5x8xf32>
    %83 = arith.mulf %81, %82 : vector<5x8xf32>
    %84 = vector.extract_strided_slice %34 {offsets = [0, 48], sizes = [5, 8], strides = [1, 1]} : vector<10x96xf32> to vector<5x8xf32>
    %85 = vector.extract_strided_slice %34 {offsets = [0, 80], sizes = [5, 8], strides = [1, 1]} : vector<10x96xf32> to vector<5x8xf32>
    %cst_42 = arith.constant dense<0.000000e+00> : vector<5x5xf32>
    %86 = tpu.matmul %83, %84, %cst_42 {dimension_numbers = #tpu.dot_dimension_numbers<[1], [1], [0], [0], [0, 0, 1, 0], [], []>} : vector<5x8xf32>, vector<5x8xf32>, vector<5x5xf32> -> vector<5x5xf32>
    %cst_43 = arith.constant dense<0xFF800000> : vector<5xf32>
    %87 = vector.multi_reduction <maximumf>, %86, %cst_43 [1] : vector<5x5xf32> to vector<5xf32>
    %88 = vector.shape_cast %87 : vector<5xf32> to vector<5x1xf32>
    %89 = vector.broadcast %88 : vector<5x1xf32> to vector<5x5xf32>
    %90 = arith.subf %86, %89 : vector<5x5xf32>
    %91 = math.exp %90 : vector<5x5xf32>
    %cst_44 = arith.constant dense<0.000000e+00> : vector<5xf32>
    %92 = vector.multi_reduction <add>, %91, %cst_44 [1] : vector<5x5xf32> to vector<5xf32>
    %93 = vector.shape_cast %92 : vector<5xf32> to vector<5x1xf32>
    %94 = tpu.reciprocal %93 {approx = true} : vector<5x1xf32> -> vector<5x1xf32>
    %95 = vector.broadcast %94 : vector<5x1xf32> to vector<5x5xf32>
    %96 = arith.mulf %91, %95 : vector<5x5xf32>
    %c0_45 = arith.constant 0 : index
    %c2 = arith.constant 2 : index
    %c0_46 = arith.constant 0 : index
    %c0_47 = arith.constant 0 : index
    %97 = vector.load %arg26[%c0_45, %c2, %c0_46, %c0_47] : memref<1x8x5x5xf32, #tpu.memory_space<vmem>>, vector<1x1x5x5xf32>
    %98 = vector.shape_cast %97 : vector<1x1x5x5xf32> to vector<5x5xf32>
    %99 = vector.shape_cast %96 : vector<5x5xf32> to vector<1x1x5x5xf32>
    tpu.vector_store %arg26[%c0_45, %c2, %c0_46, %c0_47], %99 {strides = array<i32>} : memref<1x8x5x5xf32, #tpu.memory_space<vmem>>, vector<1x1x5x5xf32>,
    %cst_48 = arith.constant dense<0.000000e+00> : vector<5x8xf32>
    %100 = tpu.matmul %96, %85, %cst_48 {dimension_numbers = #tpu.dot_dimension_numbers<[1], [0], [0], [1], [0, 0, 1, 1], [], []>} : vector<5x5xf32>, vector<5x8xf32>, vector<5x8xf32> -> vector<5x8xf32>
    %c0_49 = arith.constant 0 : index
    %c0_50 = arith.constant 0 : index
    %c16 = arith.constant 16 : index
    %101 = vector.load %arg25[%c0_49, %c0_50, %c16] : memref<1x10x32xf32, #tpu.memory_space<vmem>>, vector<1x5x8xf32>
    %102 = vector.shape_cast %101 : vector<1x5x8xf32> to vector<5x8xf32>
    %103 = vector.shape_cast %100 : vector<5x8xf32> to vector<1x5x8xf32>
    tpu.vector_store %arg25[%c0_49, %c0_50, %c16], %103 {strides = array<i32>} : memref<1x10x32xf32, #tpu.memory_space<vmem>>, vector<1x5x8xf32>,
    %104 = vector.extract_strided_slice %34 {offsets = [0, 24], sizes = [5, 8], strides = [1, 1]} : vector<10x96xf32> to vector<5x8xf32>
    %cst_51 = arith.constant 0.353553385 : f32
    %105 = vector.broadcast %cst_51 : f32 to vector<5x8xf32>
    %106 = arith.mulf %104, %105 : vector<5x8xf32>
    %107 = vector.extract_strided_slice %34 {offsets = [0, 56], sizes = [5, 8], strides = [1, 1]} : vector<10x96xf32> to vector<5x8xf32>
    %108 = vector.extract_strided_slice %34 {offsets = [0, 88], sizes = [5, 8], strides = [1, 1]} : vector<10x96xf32> to vector<5x8xf32>
    %cst_52 = arith.constant dense<0.000000e+00> : vector<5x5xf32>
    %109 = tpu.matmul %106, %107, %cst_52 {dimension_numbers = #tpu.dot_dimension_numbers<[1], [1], [0], [0], [0, 0, 1, 0], [], []>} : vector<5x8xf32>, vector<5x8xf32>, vector<5x5xf32> -> vector<5x5xf32>
    %cst_53 = arith.constant dense<0xFF800000> : vector<5xf32>
    %110 = vector.multi_reduction <maximumf>, %109, %cst_53 [1] : vector<5x5xf32> to vector<5xf32>
    %111 = vector.shape_cast %110 : vector<5xf32> to vector<5x1xf32>
    %112 = vector.broadcast %111 : vector<5x1xf32> to vector<5x5xf32>
    %113 = arith.subf %109, %112 : vector<5x5xf32>
    %114 = math.exp %113 : vector<5x5xf32>
    %cst_54 = arith.constant dense<0.000000e+00> : vector<5xf32>
    %115 = vector.multi_reduction <add>, %114, %cst_54 [1] : vector<5x5xf32> to vector<5xf32>
    %116 = vector.shape_cast %115 : vector<5xf32> to vector<5x1xf32>
    %117 = tpu.reciprocal %116 {approx = true} : vector<5x1xf32> -> vector<5x1xf32>
    %118 = vector.broadcast %117 : vector<5x1xf32> to vector<5x5xf32>
    %119 = arith.mulf %114, %118 : vector<5x5xf32>
    %c0_55 = arith.constant 0 : index
    %c3 = arith.constant 3 : index
    %c0_56 = arith.constant 0 : index
    %c0_57 = arith.constant 0 : index
    %120 = vector.load %arg26[%c0_55, %c3, %c0_56, %c0_57] : memref<1x8x5x5xf32, #tpu.memory_space<vmem>>, vector<1x1x5x5xf32>
    %121 = vector.shape_cast %120 : vector<1x1x5x5xf32> to vector<5x5xf32>
    %122 = vector.shape_cast %119 : vector<5x5xf32> to vector<1x1x5x5xf32>
    tpu.vector_store %arg26[%c0_55, %c3, %c0_56, %c0_57], %122 {strides = array<i32>} : memref<1x8x5x5xf32, #tpu.memory_space<vmem>>, vector<1x1x5x5xf32>,
    %cst_58 = arith.constant dense<0.000000e+00> : vector<5x8xf32>
    %123 = tpu.matmul %119, %108, %cst_58 {dimension_numbers = #tpu.dot_dimension_numbers<[1], [0], [0], [1], [0, 0, 1, 1], [], []>} : vector<5x5xf32>, vector<5x8xf32>, vector<5x8xf32> -> vector<5x8xf32>
    %c0_59 = arith.constant 0 : index
    %c0_60 = arith.constant 0 : index
    %c24 = arith.constant 24 : index
    %124 = vector.load %arg25[%c0_59, %c0_60, %c24] : memref<1x10x32xf32, #tpu.memory_space<vmem>>, vector<1x5x8xf32>
    %125 = vector.shape_cast %124 : vector<1x5x8xf32> to vector<5x8xf32>
    %126 = vector.shape_cast %123 : vector<5x8xf32> to vector<1x5x8xf32>
    tpu.vector_store %arg25[%c0_59, %c0_60, %c24], %126 {strides = array<i32>} : memref<1x10x32xf32, #tpu.memory_space<vmem>>, vector<1x5x8xf32>,
    %127 = vector.extract_strided_slice %34 {offsets = [5, 0], sizes = [5, 8], strides = [1, 1]} : vector<10x96xf32> to vector<5x8xf32>
    %cst_61 = arith.constant 0.353553385 : f32
    %128 = vector.broadcast %cst_61 : f32 to vector<5x8xf32>
    %129 = arith.mulf %127, %128 : vector<5x8xf32>
    %130 = vector.extract_strided_slice %34 {offsets = [5, 32], sizes = [5, 8], strides = [1, 1]} : vector<10x96xf32> to vector<5x8xf32>
    %131 = vector.extract_strided_slice %34 {offsets = [5, 64], sizes = [5, 8], strides = [1, 1]} : vector<10x96xf32> to vector<5x8xf32>
    %cst_62 = arith.constant dense<0.000000e+00> : vector<5x5xf32>
    %132 = tpu.matmul %129, %130, %cst_62 {dimension_numbers = #tpu.dot_dimension_numbers<[1], [1], [0], [0], [0, 0, 1, 0], [], []>} : vector<5x8xf32>, vector<5x8xf32>, vector<5x5xf32> -> vector<5x5xf32>
    %cst_63 = arith.constant dense<0xFF800000> : vector<5xf32>
    %133 = vector.multi_reduction <maximumf>, %132, %cst_63 [1] : vector<5x5xf32> to vector<5xf32>
    %134 = vector.shape_cast %133 : vector<5xf32> to vector<5x1xf32>
    %135 = vector.broadcast %134 : vector<5x1xf32> to vector<5x5xf32>
    %136 = arith.subf %132, %135 : vector<5x5xf32>
    %137 = math.exp %136 : vector<5x5xf32>
    %cst_64 = arith.constant dense<0.000000e+00> : vector<5xf32>
    %138 = vector.multi_reduction <add>, %137, %cst_64 [1] : vector<5x5xf32> to vector<5xf32>
    %139 = vector.shape_cast %138 : vector<5xf32> to vector<5x1xf32>
    %140 = tpu.reciprocal %139 {approx = true} : vector<5x1xf32> -> vector<5x1xf32>
    %141 = vector.broadcast %140 : vector<5x1xf32> to vector<5x5xf32>
    %142 = arith.mulf %137, %141 : vector<5x5xf32>
    %c0_65 = arith.constant 0 : index
    %c4 = arith.constant 4 : index
    %c0_66 = arith.constant 0 : index
    %c0_67 = arith.constant 0 : index
    %143 = vector.load %arg26[%c0_65, %c4, %c0_66, %c0_67] : memref<1x8x5x5xf32, #tpu.memory_space<vmem>>, vector<1x1x5x5xf32>
    %144 = vector.shape_cast %143 : vector<1x1x5x5xf32> to vector<5x5xf32>
    %145 = vector.shape_cast %142 : vector<5x5xf32> to vector<1x1x5x5xf32>
    tpu.vector_store %arg26[%c0_65, %c4, %c0_66, %c0_67], %145 {strides = array<i32>} : memref<1x8x5x5xf32, #tpu.memory_space<vmem>>, vector<1x1x5x5xf32>,
    %cst_68 = arith.constant dense<0.000000e+00> : vector<5x8xf32>
    %146 = tpu.matmul %142, %131, %cst_68 {dimension_numbers = #tpu.dot_dimension_numbers<[1], [0], [0], [1], [0, 0, 1, 1], [], []>} : vector<5x5xf32>, vector<5x8xf32>, vector<5x8xf32> -> vector<5x8xf32>
    %c0_69 = arith.constant 0 : index
    %c5 = arith.constant 5 : index
    %c0_70 = arith.constant 0 : index
    %147 = vector.load %arg25[%c0_69, %c5, %c0_70] : memref<1x10x32xf32, #tpu.memory_space<vmem>>, vector<1x5x8xf32>
    %148 = vector.shape_cast %147 : vector<1x5x8xf32> to vector<5x8xf32>
    %149 = vector.shape_cast %146 : vector<5x8xf32> to vector<1x5x8xf32>
    tpu.vector_store %arg25[%c0_69, %c5, %c0_70], %149 {strides = array<i32>} : memref<1x10x32xf32, #tpu.memory_space<vmem>>, vector<1x5x8xf32>,
    %150 = vector.extract_strided_slice %34 {offsets = [5, 8], sizes = [5, 8], strides = [1, 1]} : vector<10x96xf32> to vector<5x8xf32>
    %cst_71 = arith.constant 0.353553385 : f32
    %151 = vector.broadcast %cst_71 : f32 to vector<5x8xf32>
    %152 = arith.mulf %150, %151 : vector<5x8xf32>
    %153 = vector.extract_strided_slice %34 {offsets = [5, 40], sizes = [5, 8], strides = [1, 1]} : vector<10x96xf32> to vector<5x8xf32>
    %154 = vector.extract_strided_slice %34 {offsets = [5, 72], sizes = [5, 8], strides = [1, 1]} : vector<10x96xf32> to vector<5x8xf32>
    %cst_72 = arith.constant dense<0.000000e+00> : vector<5x5xf32>
    %155 = tpu.matmul %152, %153, %cst_72 {dimension_numbers = #tpu.dot_dimension_numbers<[1], [1], [0], [0], [0, 0, 1, 0], [], []>} : vector<5x8xf32>, vector<5x8xf32>, vector<5x5xf32> -> vector<5x5xf32>
    %cst_73 = arith.constant dense<0xFF800000> : vector<5xf32>
    %156 = vector.multi_reduction <maximumf>, %155, %cst_73 [1] : vector<5x5xf32> to vector<5xf32>
    %157 = vector.shape_cast %156 : vector<5xf32> to vector<5x1xf32>
    %158 = vector.broadcast %157 : vector<5x1xf32> to vector<5x5xf32>
    %159 = arith.subf %155, %158 : vector<5x5xf32>
    %160 = math.exp %159 : vector<5x5xf32>
    %cst_74 = arith.constant dense<0.000000e+00> : vector<5xf32>
    %161 = vector.multi_reduction <add>, %160, %cst_74 [1] : vector<5x5xf32> to vector<5xf32>
    %162 = vector.shape_cast %161 : vector<5xf32> to vector<5x1xf32>
    %163 = tpu.reciprocal %162 {approx = true} : vector<5x1xf32> -> vector<5x1xf32>
    %164 = vector.broadcast %163 : vector<5x1xf32> to vector<5x5xf32>
    %165 = arith.mulf %160, %164 : vector<5x5xf32>
    %c0_75 = arith.constant 0 : index
    %c5_76 = arith.constant 5 : index
    %c0_77 = arith.constant 0 : index
    %c0_78 = arith.constant 0 : index
    %166 = vector.load %arg26[%c0_75, %c5_76, %c0_77, %c0_78] : memref<1x8x5x5xf32, #tpu.memory_space<vmem>>, vector<1x1x5x5xf32>
    %167 = vector.shape_cast %166 : vector<1x1x5x5xf32> to vector<5x5xf32>
    %168 = vector.shape_cast %165 : vector<5x5xf32> to vector<1x1x5x5xf32>
    tpu.vector_store %arg26[%c0_75, %c5_76, %c0_77, %c0_78], %168 {strides = array<i32>} : memref<1x8x5x5xf32, #tpu.memory_space<vmem>>, vector<1x1x5x5xf32>,
    %cst_79 = arith.constant dense<0.000000e+00> : vector<5x8xf32>
    %169 = tpu.matmul %165, %154, %cst_79 {dimension_numbers = #tpu.dot_dimension_numbers<[1], [0], [0], [1], [0, 0, 1, 1], [], []>} : vector<5x5xf32>, vector<5x8xf32>, vector<5x8xf32> -> vector<5x8xf32>
    %c0_80 = arith.constant 0 : index
    %c5_81 = arith.constant 5 : index
    %c8_82 = arith.constant 8 : index
    %170 = vector.load %arg25[%c0_80, %c5_81, %c8_82] : memref<1x10x32xf32, #tpu.memory_space<vmem>>, vector<1x5x8xf32>
    %171 = vector.shape_cast %170 : vector<1x5x8xf32> to vector<5x8xf32>
    %172 = vector.shape_cast %169 : vector<5x8xf32> to vector<1x5x8xf32>
    tpu.vector_store %arg25[%c0_80, %c5_81, %c8_82], %172 {strides = array<i32>} : memref<1x10x32xf32, #tpu.memory_space<vmem>>, vector<1x5x8xf32>,
    %173 = vector.extract_strided_slice %34 {offsets = [5, 16], sizes = [5, 8], strides = [1, 1]} : vector<10x96xf32> to vector<5x8xf32>
    %cst_83 = arith.constant 0.353553385 : f32
    %174 = vector.broadcast %cst_83 : f32 to vector<5x8xf32>
    %175 = arith.mulf %173, %174 : vector<5x8xf32>
    %176 = vector.extract_strided_slice %34 {offsets = [5, 48], sizes = [5, 8], strides = [1, 1]} : vector<10x96xf32> to vector<5x8xf32>
    %177 = vector.extract_strided_slice %34 {offsets = [5, 80], sizes = [5, 8], strides = [1, 1]} : vector<10x96xf32> to vector<5x8xf32>
    %cst_84 = arith.constant dense<0.000000e+00> : vector<5x5xf32>
    %178 = tpu.matmul %175, %176, %cst_84 {dimension_numbers = #tpu.dot_dimension_numbers<[1], [1], [0], [0], [0, 0, 1, 0], [], []>} : vector<5x8xf32>, vector<5x8xf32>, vector<5x5xf32> -> vector<5x5xf32>
    %cst_85 = arith.constant dense<0xFF800000> : vector<5xf32>
    %179 = vector.multi_reduction <maximumf>, %178, %cst_85 [1] : vector<5x5xf32> to vector<5xf32>
    %180 = vector.shape_cast %179 : vector<5xf32> to vector<5x1xf32>
    %181 = vector.broadcast %180 : vector<5x1xf32> to vector<5x5xf32>
    %182 = arith.subf %178, %181 : vector<5x5xf32>
    %183 = math.exp %182 : vector<5x5xf32>
    %cst_86 = arith.constant dense<0.000000e+00> : vector<5xf32>
    %184 = vector.multi_reduction <add>, %183, %cst_86 [1] : vector<5x5xf32> to vector<5xf32>
    %185 = vector.shape_cast %184 : vector<5xf32> to vector<5x1xf32>
    %186 = tpu.reciprocal %185 {approx = true} : vector<5x1xf32> -> vector<5x1xf32>
    %187 = vector.broadcast %186 : vector<5x1xf32> to vector<5x5xf32>
    %188 = arith.mulf %183, %187 : vector<5x5xf32>
    %c0_87 = arith.constant 0 : index
    %c6 = arith.constant 6 : index
    %c0_88 = arith.constant 0 : index
    %c0_89 = arith.constant 0 : index
    %189 = vector.load %arg26[%c0_87, %c6, %c0_88, %c0_89] : memref<1x8x5x5xf32, #tpu.memory_space<vmem>>, vector<1x1x5x5xf32>
    %190 = vector.shape_cast %189 : vector<1x1x5x5xf32> to vector<5x5xf32>
    %191 = vector.shape_cast %188 : vector<5x5xf32> to vector<1x1x5x5xf32>
    tpu.vector_store %arg26[%c0_87, %c6, %c0_88, %c0_89], %191 {strides = array<i32>} : memref<1x8x5x5xf32, #tpu.memory_space<vmem>>, vector<1x1x5x5xf32>,
    %cst_90 = arith.constant dense<0.000000e+00> : vector<5x8xf32>
    %192 = tpu.matmul %188, %177, %cst_90 {dimension_numbers = #tpu.dot_dimension_numbers<[1], [0], [0], [1], [0, 0, 1, 1], [], []>} : vector<5x5xf32>, vector<5x8xf32>, vector<5x8xf32> -> vector<5x8xf32>
    %c0_91 = arith.constant 0 : index
    %c5_92 = arith.constant 5 : index
    %c16_93 = arith.constant 16 : index
    %193 = vector.load %arg25[%c0_91, %c5_92, %c16_93] : memref<1x10x32xf32, #tpu.memory_space<vmem>>, vector<1x5x8xf32>
    %194 = vector.shape_cast %193 : vector<1x5x8xf32> to vector<5x8xf32>
    %195 = vector.shape_cast %192 : vector<5x8xf32> to vector<1x5x8xf32>
    tpu.vector_store %arg25[%c0_91, %c5_92, %c16_93], %195 {strides = array<i32>} : memref<1x10x32xf32, #tpu.memory_space<vmem>>, vector<1x5x8xf32>,
    %196 = vector.extract_strided_slice %34 {offsets = [5, 24], sizes = [5, 8], strides = [1, 1]} : vector<10x96xf32> to vector<5x8xf32>
    %cst_94 = arith.constant 0.353553385 : f32
    %197 = vector.broadcast %cst_94 : f32 to vector<5x8xf32>
    %198 = arith.mulf %196, %197 : vector<5x8xf32>
    %199 = vector.extract_strided_slice %34 {offsets = [5, 56], sizes = [5, 8], strides = [1, 1]} : vector<10x96xf32> to vector<5x8xf32>
    %200 = vector.extract_strided_slice %34 {offsets = [5, 88], sizes = [5, 8], strides = [1, 1]} : vector<10x96xf32> to vector<5x8xf32>
    %cst_95 = arith.constant dense<0.000000e+00> : vector<5x5xf32>
    %201 = tpu.matmul %198, %199, %cst_95 {dimension_numbers = #tpu.dot_dimension_numbers<[1], [1], [0], [0], [0, 0, 1, 0], [], []>} : vector<5x8xf32>, vector<5x8xf32>, vector<5x5xf32> -> vector<5x5xf32>
    %cst_96 = arith.constant dense<0xFF800000> : vector<5xf32>
    %202 = vector.multi_reduction <maximumf>, %201, %cst_96 [1] : vector<5x5xf32> to vector<5xf32>
    %203 = vector.shape_cast %202 : vector<5xf32> to vector<5x1xf32>
    %204 = vector.broadcast %203 : vector<5x1xf32> to vector<5x5xf32>
    %205 = arith.subf %201, %204 : vector<5x5xf32>
    %206 = math.exp %205 : vector<5x5xf32>
    %cst_97 = arith.constant dense<0.000000e+00> : vector<5xf32>
    %207 = vector.multi_reduction <add>, %206, %cst_97 [1] : vector<5x5xf32> to vector<5xf32>
    %208 = vector.shape_cast %207 : vector<5xf32> to vector<5x1xf32>
    %209 = tpu.reciprocal %208 {approx = true} : vector<5x1xf32> -> vector<5x1xf32>
    %210 = vector.broadcast %209 : vector<5x1xf32> to vector<5x5xf32>
    %211 = arith.mulf %206, %210 : vector<5x5xf32>
    %c0_98 = arith.constant 0 : index
    %c7 = arith.constant 7 : index
    %c0_99 = arith.constant 0 : index
    %c0_100 = arith.constant 0 : index
    %212 = vector.load %arg26[%c0_98, %c7, %c0_99, %c0_100] : memref<1x8x5x5xf32, #tpu.memory_space<vmem>>, vector<1x1x5x5xf32>
    %213 = vector.shape_cast %212 : vector<1x1x5x5xf32> to vector<5x5xf32>
    %214 = vector.shape_cast %211 : vector<5x5xf32> to vector<1x1x5x5xf32>
    tpu.vector_store %arg26[%c0_98, %c7, %c0_99, %c0_100], %214 {strides = array<i32>} : memref<1x8x5x5xf32, #tpu.memory_space<vmem>>, vector<1x1x5x5xf32>,
    %cst_101 = arith.constant dense<0.000000e+00> : vector<5x8xf32>
    %215 = tpu.matmul %211, %200, %cst_101 {dimension_numbers = #tpu.dot_dimension_numbers<[1], [0], [0], [1], [0, 0, 1, 1], [], []>} : vector<5x5xf32>, vector<5x8xf32>, vector<5x8xf32> -> vector<5x8xf32>
    %c0_102 = arith.constant 0 : index
    %c5_103 = arith.constant 5 : index
    %c24_104 = arith.constant 24 : index
    %216 = vector.load %arg25[%c0_102, %c5_103, %c24_104] : memref<1x10x32xf32, #tpu.memory_space<vmem>>, vector<1x5x8xf32>
    %217 = vector.shape_cast %216 : vector<1x5x8xf32> to vector<5x8xf32>
    %218 = vector.shape_cast %215 : vector<5x8xf32> to vector<1x5x8xf32>
    tpu.vector_store %arg25[%c0_102, %c5_103, %c24_104], %218 {strides = array<i32>} : memref<1x10x32xf32, #tpu.memory_space<vmem>>, vector<1x5x8xf32>,
    %c0_105 = arith.constant 0 : index
    %c0_106 = arith.constant 0 : index
    %c0_107 = arith.constant 0 : index
    %219 = vector.load %arg25[%c0_105, %c0_106, %c0_107] : memref<1x10x32xf32, #tpu.memory_space<vmem>>, vector<1x10x32xf32>
    %220 = vector.shape_cast %219 : vector<1x10x32xf32> to vector<10x32xf32>
    %c0_108 = arith.constant 0 : index
    %c0_109 = arith.constant 0 : index
    %c0_110 = arith.constant 0 : index
    %221 = vector.load %arg10[%c0_108, %c0_109, %c0_110] : memref<1x32x32xf32, #tpu.memory_space<vmem>>, vector<1x32x32xf32>
    %222 = vector.shape_cast %221 : vector<1x32x32xf32> to vector<32x32xf32>
    %cst_111 = arith.constant dense<0.000000e+00> : vector<10x32xf32>
    %223 = tpu.matmul %220, %222, %cst_111 {dimension_numbers = #tpu.dot_dimension_numbers<[1], [0], [0], [1], [0, 0, 1, 1], [], []>} : vector<10x32xf32>, vector<32x32xf32>, vector<10x32xf32> -> vector<10x32xf32>
    %c0_112 = arith.constant 0 : index
    %c0_113 = arith.constant 0 : index
    %c0_114 = arith.constant 0 : index
    %224 = vector.load %arg11[%c0_112, %c0_113, %c0_114] : memref<1x1x32xf32, #tpu.memory_space<vmem>>, vector<1x1x32xf32>
    %225 = vector.shape_cast %224 : vector<1x1x32xf32> to vector<1x32xf32>
    %226 = vector.broadcast %225 : vector<1x32xf32> to vector<10x32xf32>
    %227 = arith.addf %223, %226 : vector<10x32xf32>
    %228 = arith.addf %3, %227 : vector<10x32xf32>
    %c0_115 = arith.constant 0 : index
    %c0_116 = arith.constant 0 : index
    %c0_117 = arith.constant 0 : index
    %229 = vector.load %arg23[%c0_115, %c0_116, %c0_117] : memref<1x10x32xf32, #tpu.memory_space<vmem>>, vector<1x10x32xf32>
    %230 = vector.shape_cast %229 : vector<1x10x32xf32> to vector<10x32xf32>
    %231 = vector.shape_cast %228 : vector<10x32xf32> to vector<1x10x32xf32>
    tpu.vector_store %arg23[%c0_115, %c0_116, %c0_117], %231 {strides = array<i32>} : memref<1x10x32xf32, #tpu.memory_space<vmem>>, vector<1x10x32xf32>,
    %c0_118 = arith.constant 0 : index
    %c0_119 = arith.constant 0 : index
    %c0_120 = arith.constant 0 : index
    %232 = vector.load %arg12[%c0_118, %c0_119, %c0_120] : memref<1x1x32xf32, #tpu.memory_space<vmem>>, vector<1x1x32xf32>
    %233 = vector.shape_cast %232 : vector<1x1x32xf32> to vector<1x32xf32>
    %c0_121 = arith.constant 0 : index
    %c0_122 = arith.constant 0 : index
    %c0_123 = arith.constant 0 : index
    %234 = vector.load %arg13[%c0_121, %c0_122, %c0_123] : memref<1x1x32xf32, #tpu.memory_space<vmem>>, vector<1x1x32xf32>
    %235 = vector.shape_cast %234 : vector<1x1x32xf32> to vector<1x32xf32>
    %cst_124 = arith.constant dense<0.000000e+00> : vector<10xf32>
    %236 = vector.multi_reduction <add>, %228, %cst_124 [1] : vector<10x32xf32> to vector<10xf32>
    %237 = vector.shape_cast %236 : vector<10xf32> to vector<10x1xf32>
    %cst_125 = arith.constant 3.200000e+01 : f32
    %238 = vector.broadcast %cst_125 : f32 to vector<10x1xf32>
    %239 = arith.divf %237, %238 : vector<10x1xf32>
    %240 = vector.broadcast %239 : vector<10x1xf32> to vector<10x32xf32>
    %241 = arith.subf %228, %240 : vector<10x32xf32>
    %242 = arith.mulf %241, %241 : vector<10x32xf32>
    %cst_126 = arith.constant dense<0.000000e+00> : vector<10xf32>
    %243 = vector.multi_reduction <add>, %242, %cst_126 [1] : vector<10x32xf32> to vector<10xf32>
    %244 = vector.shape_cast %243 : vector<10xf32> to vector<10x1xf32>
    %cst_127 = arith.constant 3.200000e+01 : f32
    %245 = vector.broadcast %cst_127 : f32 to vector<10x1xf32>
    %246 = arith.divf %244, %245 : vector<10x1xf32>
    %cst_128 = arith.constant 9.99999997E-7 : f32
    %247 = vector.broadcast %cst_128 : f32 to vector<10x1xf32>
    %248 = arith.addf %246, %247 : vector<10x1xf32>
    %249 = math.rsqrt %248 : vector<10x1xf32>
    %250 = vector.broadcast %249 : vector<10x1xf32> to vector<10x32xf32>
    %251 = arith.mulf %241, %250 : vector<10x32xf32>
    %252 = vector.broadcast %233 : vector<1x32xf32> to vector<10x32xf32>
    %253 = arith.mulf %251, %252 : vector<10x32xf32>
    %254 = vector.broadcast %235 : vector<1x32xf32> to vector<10x32xf32>
    %255 = arith.addf %253, %254 : vector<10x32xf32>
    %c0_129 = arith.constant 0 : index
    %c0_130 = arith.constant 0 : index
    %c0_131 = arith.constant 0 : index
    %256 = vector.load %arg14[%c0_129, %c0_130, %c0_131] : memref<1x32x64xf32, #tpu.memory_space<vmem>>, vector<1x32x64xf32>
    %257 = vector.shape_cast %256 : vector<1x32x64xf32> to vector<32x64xf32>
    %cst_132 = arith.constant dense<0.000000e+00> : vector<10x64xf32>
    %258 = tpu.matmul %255, %257, %cst_132 {dimension_numbers = #tpu.dot_dimension_numbers<[1], [0], [0], [1], [0, 0, 1, 1], [], []>} : vector<10x32xf32>, vector<32x64xf32>, vector<10x64xf32> -> vector<10x64xf32>
    %c0_133 = arith.constant 0 : index
    %c0_134 = arith.constant 0 : index
    %c0_135 = arith.constant 0 : index
    %259 = vector.load %arg15[%c0_133, %c0_134, %c0_135] : memref<1x1x64xf32, #tpu.memory_space<vmem>>, vector<1x1x64xf32>
    %260 = vector.shape_cast %259 : vector<1x1x64xf32> to vector<1x64xf32>
    %261 = vector.broadcast %260 : vector<1x64xf32> to vector<10x64xf32>
    %262 = arith.addf %258, %261 : vector<10x64xf32>
    %cst_136 = arith.constant 5.000000e-01 : f32
    %263 = vector.broadcast %cst_136 : f32 to vector<10x64xf32>
    %264 = arith.mulf %263, %262 : vector<10x64xf32>
    %cst_137 = arith.constant 0.707106769 : f32
    %265 = vector.broadcast %cst_137 : f32 to vector<10x64xf32>
    %266 = arith.mulf %262, %265 : vector<10x64xf32>
    %267 = math.erf %266 : vector<10x64xf32>
    %cst_138 = arith.constant 1.000000e+00 : f32
    %268 = vector.broadcast %cst_138 : f32 to vector<10x64xf32>
    %269 = arith.addf %268, %267 : vector<10x64xf32>
    %270 = arith.mulf %264, %269 : vector<10x64xf32>
    %c0_139 = arith.constant 0 : index
    %c0_140 = arith.constant 0 : index
    %c0_141 = arith.constant 0 : index
    %271 = vector.load %arg16[%c0_139, %c0_140, %c0_141] : memref<1x64x32xf32, #tpu.memory_space<vmem>>, vector<1x64x32xf32>
    %272 = vector.shape_cast %271 : vector<1x64x32xf32> to vector<64x32xf32>
    %cst_142 = arith.constant dense<0.000000e+00> : vector<10x32xf32>
    %273 = tpu.matmul %270, %272, %cst_142 {dimension_numbers = #tpu.dot_dimension_numbers<[1], [0], [0], [1], [0, 0, 1, 1], [], []>} : vector<10x64xf32>, vector<64x32xf32>, vector<10x32xf32> -> vector<10x32xf32>
    %c0_143 = arith.constant 0 : index
    %c0_144 = arith.constant 0 : index
    %c0_145 = arith.constant 0 : index
    %274 = vector.load %arg17[%c0_143, %c0_144, %c0_145] : memref<1x1x32xf32, #tpu.memory_space<vmem>>, vector<1x1x32xf32>
    %275 = vector.shape_cast %274 : vector<1x1x32xf32> to vector<1x32xf32>
    %276 = vector.broadcast %275 : vector<1x32xf32> to vector<10x32xf32>
    %277 = arith.addf %273, %276 : vector<10x32xf32>
    %278 = arith.addf %228, %277 : vector<10x32xf32>
    %c0_146 = arith.constant 0 : index
    %c0_147 = arith.constant 0 : index
    %c0_148 = arith.constant 0 : index
    %279 = vector.load %arg24[%c0_146, %c0_147, %c0_148] : memref<1x10x32xf32, #tpu.memory_space<vmem>>, vector<1x10x32xf32>
    %280 = vector.shape_cast %279 : vector<1x10x32xf32> to vector<10x32xf32>
    %281 = vector.shape_cast %278 : vector<10x32xf32> to vector<1x10x32xf32>
    tpu.vector_store %arg24[%c0_146, %c0_147, %c0_148], %281 {strides = array<i32>} : memref<1x10x32xf32, #tpu.memory_space<vmem>>, vector<1x10x32xf32>,
    %c0_149 = arith.constant 0 : index
    %c0_150 = arith.constant 0 : index
    %282 = vector.load %arg28[%c0_149, %c0_150] : memref<10x32xf32, #tpu.memory_space<vmem>>, vector<10x32xf32>
    tpu.vector_store %arg28[%c0_149, %c0_150], %278 {strides = array<i32>} : memref<10x32xf32, #tpu.memory_space<vmem>>, vector<10x32xf32>,
    %c1_i32 = arith.constant 1 : i32
    %283 = arith.cmpi eq, %arg0, %c1_i32 : i32
    %284 = arith.extui %283 : i1 to i32
    %c0_i32_151 = arith.constant 0 : i32
    %285 = arith.cmpi ne, %284, %c0_i32_151 : i32
    scf.if %285 {
      %c0_152 = arith.constant 0 : index
      %c0_153 = arith.constant 0 : index
      %286 = vector.load %arg18[%c0_152, %c0_153] : memref<1x32xf32, #tpu.memory_space<vmem>>, vector<1x32xf32>
      %c0_154 = arith.constant 0 : index
      %c0_155 = arith.constant 0 : index
      %287 = vector.load %arg19[%c0_154, %c0_155] : memref<1x32xf32, #tpu.memory_space<vmem>>, vector<1x32xf32>
      %cst_156 = arith.constant dense<0.000000e+00> : vector<10xf32>
      %288 = vector.multi_reduction <add>, %278, %cst_156 [1] : vector<10x32xf32> to vector<10xf32>
      %289 = vector.shape_cast %288 : vector<10xf32> to vector<10x1xf32>
      %cst_157 = arith.constant 3.200000e+01 : f32
      %290 = vector.broadcast %cst_157 : f32 to vector<10x1xf32>
      %291 = arith.divf %289, %290 : vector<10x1xf32>
      %292 = vector.broadcast %291 : vector<10x1xf32> to vector<10x32xf32>
      %293 = arith.subf %278, %292 : vector<10x32xf32>
      %294 = arith.mulf %293, %293 : vector<10x32xf32>
      %cst_158 = arith.constant dense<0.000000e+00> : vector<10xf32>
      %295 = vector.multi_reduction <add>, %294, %cst_158 [1] : vector<10x32xf32> to vector<10xf32>
      %296 = vector.shape_cast %295 : vector<10xf32> to vector<10x1xf32>
      %cst_159 = arith.constant 3.200000e+01 : f32
      %297 = vector.broadcast %cst_159 : f32 to vector<10x1xf32>
      %298 = arith.divf %296, %297 : vector<10x1xf32>
      %cst_160 = arith.constant 9.99999997E-7 : f32
      %299 = vector.broadcast %cst_160 : f32 to vector<10x1xf32>
      %300 = arith.addf %298, %299 : vector<10x1xf32>
      %301 = math.rsqrt %300 : vector<10x1xf32>
      %302 = vector.broadcast %301 : vector<10x1xf32> to vector<10x32xf32>
      %303 = arith.mulf %293, %302 : vector<10x32xf32>
      %304 = vector.broadcast %286 : vector<1x32xf32> to vector<10x32xf32>
      %305 = arith.mulf %303, %304 : vector<10x32xf32>
      %306 = vector.broadcast %287 : vector<1x32xf32> to vector<10x32xf32>
      %307 = arith.addf %305, %306 : vector<10x32xf32>
      %c0_161 = arith.constant 0 : index
      %c0_162 = arith.constant 0 : index
      %308 = vector.load %arg20[%c0_161, %c0_162] : memref<32x8xf32, #tpu.memory_space<vmem>>, vector<32x8xf32>
      %cst_163 = arith.constant dense<0.000000e+00> : vector<10x8xf32>
      %309 = tpu.matmul %307, %308, %cst_163 {dimension_numbers = #tpu.dot_dimension_numbers<[1], [0], [0], [1], [0, 0, 1, 1], [], []>} : vector<10x32xf32>, vector<32x8xf32>, vector<10x8xf32> -> vector<10x8xf32>
      %c0_164 = arith.constant 0 : index
      %c0_165 = arith.constant 0 : index
      %310 = vector.load %arg21[%c0_164, %c0_165] : memref<1x8xf32, #tpu.memory_space<vmem>>, vector<1x8xf32>
      %311 = vector.broadcast %310 : vector<1x8xf32> to vector<10x8xf32>
      %312 = arith.addf %309, %311 : vector<10x8xf32>
      %313 = vector.extract_strided_slice %312 {offsets = [0, 0], sizes = [1, 8], strides = [1, 1]} : vector<10x8xf32> to vector<1x8xf32>
      %c0_166 = arith.constant 0 : index
      %c0_167 = arith.constant 0 : index
      %314 = vector.load %arg27[%c0_166, %c0_167] : memref<2x8xf32, #tpu.memory_space<vmem>>, vector<1x8xf32>
      tpu.vector_store %arg27[%c0_166, %c0_167], %313 {strides = array<i32>} : memref<2x8xf32, #tpu.memory_space<vmem>>, vector<1x8xf32>,
      %315 = vector.extract_strided_slice %312 {offsets = [5, 0], sizes = [1, 8], strides = [1, 1]} : vector<10x8xf32> to vector<1x8xf32>
      %c1_168 = arith.constant 1 : index
      %c0_169 = arith.constant 0 : index
      %316 = vector.load %arg27[%c1_168, %c0_169] : memref<2x8xf32, #tpu.memory_space<vmem>>, vector<1x8xf32>
      tpu.vector_store %arg27[%c1_168, %c0_169], %315 {strides = array<i32>} : memref<2x8xf32, #tpu.memory_space<vmem>>, vector<1x8xf32>,
    } else {
    }
    return
  }
  func.func @transform_0(%arg0: i32) -> (i32, i32) {
    %c0_i32 = arith.constant 0 : i32
    %c0_i32_0 = arith.constant 0 : i32
    %c0_i32_1 = arith.constant 0 : i32
    return %c0_i32, %c0_i32_0 : i32, i32
  }
  func.func @transform_1(%arg0: i32) -> (i32, i32) {
    %c0_i32 = arith.constant 0 : i32
    %c0_i32_0 = arith.constant 0 : i32
    %c0_i32_1 = arith.constant 0 : i32
    return %c0_i32, %c0_i32_0 : i32, i32
  }
  func.func @transform_2(%arg0: i32) -> (i32, i32) {
    %c0_i32 = arith.constant 0 : i32
    %c0_i32_0 = arith.constant 0 : i32
    %c0_i32_1 = arith.constant 0 : i32
    return %c0_i32, %c0_i32_0 : i32, i32
  }
  func.func @transform_3(%arg0: i32) -> (i32, i32) {
    %c0_i32 = arith.constant 0 : i32
    %c0_i32_0 = arith.constant 0 : i32
    %c0_i32_1 = arith.constant 0 : i32
    return %c0_i32, %c0_i32_0 : i32, i32
  }
  func.func @transform_4(%arg0: i32) -> (i32, i32) {
    %c0_i32 = arith.constant 0 : i32
    %c0_i32_0 = arith.constant 0 : i32
    %c0_i32_1 = arith.constant 0 : i32
    return %c0_i32, %c0_i32_0 : i32, i32
  }
  func.func @transform_5(%arg0: i32) -> (i32, i32, i32) {
    %c0_i32 = arith.constant 0 : i32
    %c0_i32_0 = arith.constant 0 : i32
    %c0_i32_1 = arith.constant 0 : i32
    return %arg0, %c0_i32, %c0_i32_0 : i32, i32, i32
  }
  func.func @transform_6(%arg0: i32) -> (i32, i32, i32) {
    %c0_i32 = arith.constant 0 : i32
    %c0_i32_0 = arith.constant 0 : i32
    %c0_i32_1 = arith.constant 0 : i32
    return %arg0, %c0_i32, %c0_i32_0 : i32, i32, i32
  }
  func.func @transform_7(%arg0: i32) -> (i32, i32, i32) {
    %c0_i32 = arith.constant 0 : i32
    %c0_i32_0 = arith.constant 0 : i32
    %c0_i32_1 = arith.constant 0 : i32
    return %arg0, %c0_i32, %c0_i32_0 : i32, i32, i32
  }
  func.func @transform_8(%arg0: i32) -> (i32, i32, i32) {
    %c0_i32 = arith.constant 0 : i32
    %c0_i32_0 = arith.constant 0 : i32
    %c0_i32_1 = arith.constant 0 : i32
    return %arg0, %c0_i32, %c0_i32_0 : i32, i32, i32
  }
  func.func @transform_9(%arg0: i32) -> (i32, i32, i32) {
    %c0_i32 = arith.constant 0 : i32
    %c0_i32_0 = arith.constant 0 : i32
    %c0_i32_1 = arith.constant 0 : i32
    return %arg0, %c0_i32, %c0_i32_0 : i32, i32, i32
  }
  func.func @transform_10(%arg0: i32) -> (i32, i32, i32) {
    %c0_i32 = arith.constant 0 : i32
    %c0_i32_0 = arith.constant 0 : i32
    %c0_i32_1 = arith.constant 0 : i32
    return %arg0, %c0_i32, %c0_i32_0 : i32, i32, i32
  }
  func.func @transform_11(%arg0: i32) -> (i32, i32, i32) {
    %c0_i32 = arith.constant 0 : i32
    %c0_i32_0 = arith.constant 0 : i32
    %c0_i32_1 = arith.constant 0 : i32
    return %arg0, %c0_i32, %c0_i32_0 : i32, i32, i32
  }
  func.func @transform_12(%arg0: i32) -> (i32, i32, i32) {
    %c0_i32 = arith.constant 0 : i32
    %c0_i32_0 = arith.constant 0 : i32
    %c0_i32_1 = arith.constant 0 : i32
    return %arg0, %c0_i32, %c0_i32_0 : i32, i32, i32
  }
  func.func @transform_13(%arg0: i32) -> (i32, i32, i32) {
    %c0_i32 = arith.constant 0 : i32
    %c0_i32_0 = arith.constant 0 : i32
    %c0_i32_1 = arith.constant 0 : i32
    return %arg0, %c0_i32, %c0_i32_0 : i32, i32, i32
  }
  func.func @transform_14(%arg0: i32) -> (i32, i32, i32) {
    %c0_i32 = arith.constant 0 : i32
    %c0_i32_0 = arith.constant 0 : i32
    %c0_i32_1 = arith.constant 0 : i32
    return %arg0, %c0_i32, %c0_i32_0 : i32, i32, i32
  }
  func.func @transform_15(%arg0: i32) -> (i32, i32, i32) {
    %c0_i32 = arith.constant 0 : i32
    %c0_i32_0 = arith.constant 0 : i32
    %c0_i32_1 = arith.constant 0 : i32
    return %arg0, %c0_i32, %c0_i32_0 : i32, i32, i32
  }
  func.func @transform_16(%arg0: i32) -> (i32, i32, i32) {
    %c0_i32 = arith.constant 0 : i32
    %c0_i32_0 = arith.constant 0 : i32
    %c0_i32_1 = arith.constant 0 : i32
    return %arg0, %c0_i32, %c0_i32_0 : i32, i32, i32
  }
  func.func @transform_17(%arg0: i32) -> (i32, i32) {
    %c0_i32 = arith.constant 0 : i32
    %c0_i32_0 = arith.constant 0 : i32
    %c0_i32_1 = arith.constant 0 : i32
    return %c0_i32, %c0_i32_0 : i32, i32
  }
  func.func @transform_18(%arg0: i32) -> (i32, i32) {
    %c0_i32 = arith.constant 0 : i32
    %c0_i32_0 = arith.constant 0 : i32
    %c0_i32_1 = arith.constant 0 : i32
    return %c0_i32, %c0_i32_0 : i32, i32
  }
  func.func @transform_19(%arg0: i32) -> (i32, i32) {
    %c0_i32 = arith.constant 0 : i32
    %c0_i32_0 = arith.constant 0 : i32
    %c0_i32_1 = arith.constant 0 : i32
    return %c0_i32, %c0_i32_0 : i32, i32
  }
  func.func @transform_20(%arg0: i32) -> (i32, i32) {
    %c0_i32 = arith.constant 0 : i32
    %c0_i32_0 = arith.constant 0 : i32
    %c0_i32_1 = arith.constant 0 : i32
    return %c0_i32, %c0_i32_0 : i32, i32
  }
  func.func @transform_21(%arg0: i32) -> (i32, i32) {
    %c0_i32 = arith.constant 0 : i32
    %c0_i32_0 = arith.constant 0 : i32
    %c0_i32_1 = arith.constant 0 : i32
    return %c0_i32, %c0_i32_0 : i32, i32
  }
  func.func @transform_22(%arg0: i32) -> (i32, i32, i32) {
    %c0_i32 = arith.constant 0 : i32
    %c0_i32_0 = arith.constant 0 : i32
    %c0_i32_1 = arith.constant 0 : i32
    return %arg0, %c0_i32, %c0_i32_0 : i32, i32, i32
  }
  func.func @transform_23(%arg0: i32) -> (i32, i32, i32) {
    %c0_i32 = arith.constant 0 : i32
    %c0_i32_0 = arith.constant 0 : i32
    %c0_i32_1 = arith.constant 0 : i32
    return %arg0, %c0_i32, %c0_i32_0 : i32, i32, i32
  }
  func.func @transform_24(%arg0: i32) -> (i32, i32, i32) {
    %c0_i32 = arith.constant 0 : i32
    %c0_i32_0 = arith.constant 0 : i32
    %c0_i32_1 = arith.constant 0 : i32
    return %arg0, %c0_i32, %c0_i32_0 : i32, i32, i32
  }
  func.func @transform_25(%arg0: i32) -> (i32, i32, i32, i32) {
    %c0_i32 = arith.constant 0 : i32
    %c0_i32_0 = arith.constant 0 : i32
    %c0_i32_1 = arith.constant 0 : i32
    %c0_i32_2 = arith.constant 0 : i32
    return %arg0, %c0_i32, %c0_i32_0, %c0_i32_1 : i32, i32, i32, i32
  }
  func.func @transform_26(%arg0: i32) -> (i32, i32) {
    %c0_i32 = arith.constant 0 : i32
    %c0_i32_0 = arith.constant 0 : i32
    %c0_i32_1 = arith.constant 0 : i32
    return %c0_i32, %c0_i32_0 : i32, i32
  }
}

</mosaic_0001>

<bundles_post_ra>
// kernel: tpu_custom_call.1
= control target key start
LH: loop header
LB: loop body
LE: loop exit
PB: predicated region body
PF: predicated region fallthrough
CT: control target
= control target key end

     0   :  { %s4786_s0 = inlined_call_operand.vmem [shape: f32[8,256], index: 0, kind: input, shape index: {}]   ;;  %s4787_s1 = inlined_call_operand.vmem [shape: f32[256,32], index: 1, kind: input, shape index: {}]   ;;  %s4788_s2 = inlined_call_operand.vmem [shape: f32[1,32], index: 2, kind: input, shape index: {}]   ;;  %s4789_s3 = inlined_call_operand.vmem [shape: f32[1,32], index: 3, kind: input, shape index: {}]   ;;  %s4790_s4 = inlined_call_operand.vmem [shape: f32[5,32], index: 4, kind: input, shape index: {}]   ;;  %s4791_s5 = inlined_call_operand.vmem [shape: f32[2,1,32], index: 5, kind: input, shape index: {}]   ;;  %s4792_s6 = inlined_call_operand.vmem [shape: f32[2,1,32], index: 6, kind: input, shape index: {}]   ;;  %s4793_s7 = inlined_call_operand.vmem [shape: f32[2,32,96], index: 7, kind: input, shape index: {}]   ;;  %s4794_s8 = inlined_call_operand.vmem [shape: f32[2,1,96], index: 8, kind: input, shape index: {}]   ;;  %s4795_s9 = inlined_call_operand.vmem [shape: f32[2,32,32], index: 9, kind: input, shape index: {}]   ;;  %s4796_s10 = inlined_call_operand.vmem [shape: f32[2,1,32], index: 10, kind: input, shape index: {}]   ;;  %s4797_s11 = inlined_call_operand.vmem [shape: f32[2,1,32], index: 11, kind: input, shape index: {}]   ;;  %s4798_s12 = inlined_call_operand.vmem [shape: f32[2,1,32], index: 12, kind: input, shape index: {}]   ;;  %s4799_s13 = inlined_call_operand.vmem [shape: f32[2,32,64], index: 13, kind: input, shape index: {}]   ;;  %s4800_s14 = inlined_call_operand.vmem [shape: f32[2,1,64], index: 14, kind: input, shape index: {}]   ;;  %s4801_s15 = inlined_call_operand.vmem [shape: f32[2,64,32], index: 15, kind: input, shape index: {}]   ;;  %s4802_s16 = inlined_call_operand.vmem [shape: f32[2,1,32], index: 16, kind: input, shape index: {}]   ;;  %s4803_s17 = inlined_call_operand.vmem [shape: f32[1,32], index: 17, kind: input, shape index: {}]   ;;  %s4804_s18 = inlined_call_operand.vmem [shape: f32[1,32], index: 18, kind: input, shape index: {}]   ;;  %s4805_s19 = inlined_call_operand.vmem [shape: f32[32,8], index: 19, kind: input, shape index: {}]   ;;  %s4806_s20 = inlined_call_operand.vmem [shape: f32[1,8], index: 20, kind: input, shape index: {}]   ;;  %s4807_s21 = inlined_call_operand.hbm [shape: f32[10,32], index: 21, kind: output, shape index: {0}]   ;;  %s4808_s22 = inlined_call_operand.vmem [shape: f32[2,10,32], index: 22, kind: output, shape index: {1}]   ;;  %s4809_s23 = inlined_call_operand.vmem [shape: f32[2,10,32], index: 23, kind: output, shape index: {2}]   ;;  %s4810_s24 = inlined_call_operand.vmem [shape: f32[2,10,32], index: 24, kind: output, shape index: {3}]   ;;  %s4811_s25 = inlined_call_operand.vmem [shape: f32[2,8,5,5], index: 25, kind: output, shape index: {4}]   ;;  %s4812_s26 = inlined_call_operand.hbm [shape: f32[2,8], index: 26, kind: output, shape index: {5}]  }
   0x1   :  { %4824 = sst [smem:[#allocation11_spill]] %s4786_s0 }
   0x2   :  { %4825 = sst [smem:[#allocation12_spill]] %s4787_s1 }
   0x3   :  { %4826 = sst [smem:[#allocation13_spill]] %s4788_s2 }
   0x4   :  { %4827 = sst [smem:[#allocation14_spill]] %s4789_s3 }
   0x5   :  { %4828 = sst [smem:[#allocation15_spill]] %s4790_s4 }
   0x6   :  { %4829 = sst [smem:[#allocation16_spill]] %s4791_s5 }
   0x7   :  { %4830 = sst [smem:[#allocation17_spill]] %s4792_s6 }
   0x8   :  { %4831 = sst [smem:[#allocation18_spill]] %s4793_s7 }
   0x9   :  { %4832 = sst [smem:[#allocation19_spill]] %s4794_s8 }
   0xa   :  { %4833 = sst [smem:[#allocation20_spill]] %s4795_s9 }
   0xb   :  { %4834 = sst [smem:[#allocation21_spill]] %s4796_s10 }
   0xc   :  { %4835 = sst [smem:[#allocation22_spill]] %s4799_s13 }
   0xd   :  { %4836 = sst [smem:[#allocation23_spill]] %s4803_s17 }
   0xe   :  { %4837 = sst [smem:[#allocation24_spill]] %s4804_s18 }
   0xf   :  { %4838 = sst [smem:[#allocation25_spill]] %s4805_s19 }
  0x10   :  { %4839 = sst [smem:[#allocation26_spill]] %s4806_s20 }
  0x11   :  { %4840 = sst [smem:[#allocation27_spill]] %s4807_s21 }
  0x12   :  { %4841 = sst [smem:[#allocation28_spill]] %s4812_s26 }
  0x13   :  { %32 = vsyncpa [#allocation4], 0 }
  0x14   :  { %33 = vsyncpa [#allocation6], 0  ;;  %s4202_s27 = smov 0  }
  0x15 LB: > { %4842 = sst [smem:[#allocation9_spill]] %s4046_s27  ;;  %s4208_s3 = sadd.s32 4294967295, %s4046_s27   ;;  %s4046_s27 = sphi %s4202_s27, %s39_s27  }
  0x16   : > { %4843 = sst [smem:[#allocation10_spill]] %s4208_s3  ;;  %p3475_p0 = scmp.ge.s32.totalorder %s4046_s27, 1 }
  0x17   : > { %p809_p1 = scmp.lt.s32.totalorder %s4046_s27, 3 }
  0x19   : > { %p810_p2 = pnand %p3475_p0, %p809_p1 }
  0x1a   : > { %p933_p3 = scmp.lt.s32.totalorder (!%p810_p2), %s4208_s3, 1  ;;  %s4847_s26 = sld [smem:[#allocation18_spill]] (!%p810_p2) }
  0x1b   : > { %813 = sbr.rel (%p810_p2) target bundleno = 3482 (0xd9a), region = 104  ;;  %s4848_s17 = sld [smem:[#allocation20_spill]] (!%p810_p2) }
  0x1c   : > { %s4850_s13 = sld [smem:[#allocation22_spill]] (!%p810_p2) }
  0x1d   : > { %s4851_s30 = sld [smem:[#allocation10_spill]] (!%p810_p2) }
  0x22   : > { %s4214_s7 = scalar_select %p933_p3, %s4208_s3, 1 }
  0x23   : > { %p3492_p4 = scmp.ne.s32.totalorder %s4851_s30, 0 }
  0x24   : > { %s3561_s5 = sshll.u32 %s4214_s7, 5  ;;  %s3564_s28 = sshll.u32 %s4214_s7, 6  ;;  %vm1115_vm0 = vcmask (!%p3492_p4), 253952   ;;  %vm1119_vm1 = vcmask (!%p3492_p4), 257024   ;;  %vm1130_vm2 = vcmask (!%p3492_p4), 261124   ;;  %vm1134_vm3 = vcmask (!%p3492_p4), 261120  }
  0x25   : > { %s4232_s21 = scalar_lea.vmem %s4847_s26, %s3561_s5  ;;  %s4237_s19 = scalar_lea.vmem %s4848_s17, %s3561_s5  ;;  %vm1136_vm4 = vcmask (!%p3492_p4), 254976  }
  0x26   : > { %s4254_s8 = scalar_lea.vmem %s4850_s13, %s3561_s5  ;;  %s4264_s4 = scalar_lea.vmem %s4801_s15, %s3564_s28 }
  0x27   : > { %s3565_s6 = sshll.u32 %s4214_s7, 4  ;;  %s4274_s5 = scalar_lea.vmem %s4811_s25, %s3564_s28 }
  0x28   : > { %s4279_s18 = scalar_lea.vmem %s4808_s22, %s3565_s6  ;;  %s4284_s29 = scalar_lea.vmem %s4809_s23, %s3565_s6 }
  0x29   : > { %s4289_s9 = scalar_lea.vmem %s4810_s24, %s3565_s6  ;;  %1000 = sbr.rel (%p3492_p4) target bundleno = 313 (0x139), region = 108 }
  0x2a   : > { %s4852_s1 = sld [smem:[#allocation12_spill]] (!%p3492_p4)  ;;  %s4853_s20 = sld [smem:[#allocation11_spill]] (!%p3492_p4) }
  0x2b   : > { %s4854_s6 = sld [smem:[#allocation14_spill]] (!%p3492_p4)  ;;  %s4855_s2 = sld [smem:[#allocation15_spill]] (!%p3492_p4) }
  0x2c   : > { %s4856_s3 = sld [smem:[#allocation13_spill]] (!%p3492_p4) }
  0x30   : > { %v1019_v0 = vld [vmem:[%s4852_s1 + $0x80] sm:$0xff]  ;;  %v1020_v1 = vld [vmem:[%s4852_s1 + $0x88] sm:$0xff]  ;;  %v1021_v5 = vld [vmem:[%s4852_s1 + $0x90] sm:$0xff] }
  0x31   : > { %v1003_v2 = vld [vmem:[%s4852_s1] sm:$0xff]  ;;  %v3813_v3 = vpack.c.bf16 %v1020_v1, %v1019_v0  ;;  %v1004_v4 = vld [vmem:[%s4852_s1 + $0x8] sm:$0xff]  ;;  %v1022_v6 = vld [vmem:[%s4852_s1 + $0x98] sm:$0xff] }
  0x32   : > { %v3815_v7 = vpack.c.bf16 %v1004_v4, %v1003_v2  ;;  %v3817_v8 = vpack.c.bf16 %v1022_v6, %v1021_v5  ;;  %v1005_v9 = vld [vmem:[%s4852_s1 + $0x10] sm:$0xff]  ;;  %v1006_v10 = vld [vmem:[%s4852_s1 + $0x18] sm:$0xff]  ;;  %v1023_v11 = vld [vmem:[%s4852_s1 + $0xa0] sm:$0xff] }
  0x33   : > { %3814 = vmatprep.subr.bf16.mxu0 %v3813_v3  ;;  %v1024_v12 = vld [vmem:[%s4852_s1 + $0xa8] sm:$0xff]  ;;  %v3819_v13 = vpack.c.bf16 %v1006_v10, %v1005_v9  ;;  %v1007_v15 = vld [vmem:[%s4852_s1 + $0x20] sm:$0xff]  ;;  %v1025_v17 = vld [vmem:[%s4852_s1 + $0xb0] sm:$0xff] }
  0x34   : > { %3816 = vmatpush3.bf16.msra.mxu0 %v3815_v7  ;;  %v3821_v14 = vpack.c.bf16 %v1024_v12, %v1023_v11  ;;  %v1008_v16 = vld [vmem:[%s4852_s1 + $0x28] sm:$0xff]  ;;  %v1026_v18 = vld [vmem:[%s4852_s1 + $0xb8] sm:$0xff]  ;;  %v1009_v21 = vld [vmem:[%s4852_s1 + $0x30] sm:$0xff] }
  0x35   : > { %3818 = vmatprep.subr.bf16.mxu0 %v3817_v8  ;;  %v3823_v19 = vpack.c.bf16 %v1008_v16, %v1007_v15  ;;  %v3825_v20 = vpack.c.bf16 %v1026_v18, %v1025_v17  ;;  %v1010_v22 = vld [vmem:[%s4852_s1 + $0x38] sm:$0xff]  ;;  %v1027_v23 = vld [vmem:[%s4852_s1 + $0xc0] sm:$0xff]  ;;  %v1028_v24 = vld [vmem:[%s4852_s1 + $0xc8] sm:$0xff] }
  0x36   : > { %v1002_v25 = vld [vmem:[%s4853_s20 + $0x8] sm:$0xff]  ;;  %v3827_v26 = vpack.c.bf16 %v1010_v22, %v1009_v21  ;;  %v3829_v27 = vpack.c.bf16 %v1028_v24, %v1027_v23  ;;  %v1011_v28 = vld [vmem:[%s4852_s1 + $0x40] sm:$0xff]  ;;  %v1029_v30 = vld [vmem:[%s4852_s1 + $0xd0] sm:$0xff] }
  0x37   : > { %1106 = vmatprep.mubr.f32.mxu0 %v1002_v25  ;;  %v1012_v29 = vld [vmem:[%s4852_s1 + $0x48] sm:$0xff]  ;;  %v1030_v31 = vld [vmem:[%s4852_s1 + $0xd8] sm:$0xff]  ;;  %v1013_v34 = vld [vmem:[%s4852_s1 + $0x50] sm:$0xff] }
  0x38   : > { %3820 = vmatpush3.bf16.msra.mxu0 %v3819_v13  ;;  %v3831_v32 = vpack.c.bf16 %v1012_v29, %v1011_v28  ;;  %v3833_v33 = vpack.c.bf16 %v1030_v31, %v1029_v30  ;;  %v1014_v35 = vld [vmem:[%s4852_s1 + $0x58] sm:$0xff]  ;;  %v1031_v36 = vld [vmem:[%s4852_s1 + $0xe0] sm:$0xff]  ;;  %v1032_v37 = vld [vmem:[%s4852_s1 + $0xe8] sm:$0xff] }
  0x39   : > { %3822 = vmatprep.subr.bf16.mxu0 %v3821_v14  ;;  %v3835_v38 = vpack.c.bf16 %v1014_v35, %v1013_v34  ;;  %v3837_v39 = vpack.c.bf16 %v1032_v37, %v1031_v36  ;;  %v1015_v40 = vld [vmem:[%s4852_s1 + $0x60] sm:$0xff]  ;;  %v1016_v41 = vld [vmem:[%s4852_s1 + $0x68] sm:$0xff]  ;;  %v1033_v42 = vld [vmem:[%s4852_s1 + $0xf0] sm:$0xff] }
  0x3a   : > { %v1034_v43 = vld [vmem:[%s4852_s1 + $0xf8] sm:$0xff]  ;;  %v3839_v44 = vpack.c.bf16 %v1016_v41, %v1015_v40  ;;  %v1017_v46 = vld [vmem:[%s4852_s1 + $0x70] sm:$0xff]  ;;  %v1001_v49 = vld [vmem:[%s4853_s20] sm:$0xff] }
  0x3b   : > { %v3841_v45 = vpack.c.bf16 %v1034_v43, %v1033_v42  ;;  %v1018_v47 = vld [vmem:[%s4852_s1 + $0x78] sm:$0xff]  ;;  %v1112_v50 = vld [vmem:[%s4854_s6] sm:$0x1]  ;;  %v1125_v56 = vld [vmem:[%s4855_s2 + $0x1] sm:$0xf] }
  0x3c   : > { %3824 = vmatpush3.bf16.msra.mxu0 %v3823_v19  ;;  %v3843_v48 = vpack.c.bf16 %v1018_v47, %v1017_v46  ;;  %v1113_v51 = vld [vmem:[%s4855_s2] sm:$0x1]  ;;  %v1127_v61 = vrot.slane %v1125_v56, 4  ;;  %v1117_v62 = vld [vmem:[%s4855_s2 + $0x1] sm:$0xf] }
  0x3d   : > { %3826 = vmatprep.subr.bf16.mxu0 %v3825_v20  ;;  %v1114_v52 = vadd.f32 %v1113_v51, %v1112_v50  ;;  %v1121_v53 = vld [vmem:[%s4854_s6] sm:$0x1] }
  0x3e   : > { %v1122_v54 = vld [vmem:[%s4855_s2] sm:$0x1] }
  0x3f   : > { %v1123_v55 = vadd.f32 %v1122_v54, %v1121_v53  ;;  %1116 = vst.msk [vmem:[#allocation2] sm:$0x1] %vm1115_vm0, %v1114_v52  ;;  %v3493_v58 = vld [vmem:[%s4856_s3] ss:$0 sm:$0xff] }
  0x40   : > { %3828 = vmatpush3.bf16.msra.mxu0 %v3827_v26 }
  0x41   : > { %3830 = vmatprep.subr.bf16.mxu0 %v3829_v27  ;;  %1124 = vst.msk [vmem:[#allocation2 + $0x5] sm:$0x1] %vm1115_vm0, %v1123_v55 }
  0x44   : > { %3832 = vmatpush3.bf16.msra.mxu0 %v3831_v32 }
  0x45   : > { %3834 = vmatprep.subr.bf16.mxu0 %v3833_v33 }
  0x48   : > { %3836 = vmatpush3.bf16.msra.mxu0 %v3835_v38 }
  0x49   : > { %3838 = vmatprep.subr.bf16.mxu0 %v3837_v39 }
  0x4c   : > { %3840 = vmatpush3.bf16.msra.mxu0 %v3839_v44 }
  0x4d   : > { %3842 = vmatprep.subr.bf16.mxu0 %v3841_v45 }
  0x50   : > { %3844 = vmatpush3.bf16.msra.mxu0 %v3843_v48 }
  0x53   : > { %1107 = vmatmul.mubr.f32.vlgmr.msra.gmra.mrb[0].mxu0 %v1001_v49 }
 0x126   : > { %v3601_v57 = vpop.f32.mrb[0].mxu0 }
 0x127   : > { %v3602_v59 = vpop.f32.mrb[1].mxu0 }
 0x128   : > { %v3603_v60 = vadd.f32 %v3602_v59, %v3601_v57 }
 0x12a   : > { %v1109_v63 = vadd.f32 %v3603_v60, %v3493_v58 }
 0x12c   : > { %v1118_v0 = vadd.f32 %v1117_v62, %v1109_v63  ;;  %v1129_v1 = vadd.f32 %v1127_v61, %v1109_v63 }
 0x12e   : > { %1120 = vst.msk [vmem:[#allocation2 + $0x1] sm:$0xf] %vm1119_vm1, %v1118_v0 }
 0x12f   : > { %1131 = vst.msk [vmem:[#allocation2 + $0x2] sm:$0xf0] %vm1130_vm2, %v1129_v1 }
 0x136   : > { %v1132_v2 = vld [vmem:[#allocation2] sm:$0xff]  ;;  %v1133_v3 = vld [vmem:[#allocation2 + $0x8] sm:$0x3] }
 0x137   : > { %1135 = vst.msk [vmem:[#allocation3] sm:$0xff] %vm1134_vm3, %v1132_v2 }
 0x138   : > { %1137 = vst.msk [vmem:[#allocation3 + $0x8] sm:$0x3] %vm1136_vm4, %v1133_v3 }
 0x139 PF: > { %v4415_v4 = vld [vmem:[#allocation2] sm:$0xff]  ;;  %vm1142_vm5 = vcmask 261120   ;;  %v4417_v5 = vld [vmem:[#allocation2 + $0x8] sm:$0x3]  ;;  %vm1146_vm6 = vcmask 254976   ;;  %v1189_v20 = vld [vmem:[%s4232_s21 + $0x10] sm:$0xff] }
 0x13a   : > { %v1143_v6 = vsel %vm1142_vm5, %v4415_v4, 0.0  ;;  %v1147_v7 = vsel %vm1146_vm6, %v4417_v5, 0.0  ;;  %v1187_v18 = vld [vmem:[%s4232_s21] sm:$0xff]  ;;  %v1188_v19 = vld [vmem:[%s4232_s21 + $0x8] sm:$0xff]  ;;  %v1190_v22 = vld [vmem:[%s4232_s21 + $0x18] sm:$0xff]  ;;  %s4857_s27 = sld [smem:[#allocation16_spill]] }
 0x13b   : > { %1144 = vadd.xlane.f32.xlu0 %v1143_v6  ;;  %v3845_v21 = vpack.c.bf16 %v1188_v19, %v1187_v18  ;;  %v3849_v23 = vpack.c.bf16 %v1190_v22, %v1189_v20  ;;  %s4859_s17 = sld [smem:[#allocation17_spill]]  ;;  %v4048_v40 = vmov 0.0   ;;  %vm4049_vm7 = vmmov 0   ;;  %s4861_s28 = sld [smem:[#allocation19_spill]] }
 0x13c   : > { %3691 = vmatprep.subr.mxu0 %v4048_v40  ;;  %3693 = vmatprep.mubr.msk.f32.mxu0 %vm4049_vm7, %v4048_v40  ;;  %s4050_s1 = smov 88   ;;  %s4053_s21 = smov 120   ;;  %vm1977_vm8 = vcmask 1042432   ;;  %vm1283_vm9 = vcmask 64512   ;;  %vm1359_vm10 = vcmask 36864   ;;  %vm1378_vm11 = vcmask 1044480  }
 0x13d   : > { %3846 = vmatprep.subr.bf16.mxu1 %v3845_v21  ;;  %s4054_s26 = smov 104   ;;  %s4057_s3 = smov 64   ;;  %vm1374_vm12 = vcmask 39936   ;;  %vm1451_vm13 = vcmask 61440   ;;  %vm1625_vm14 = vcmask 127040   ;;  %vm1799_vm15 = vcmask 192640  }
 0x13e   : > { %3848 = vmatpush3.bf16.msra.mxu1 %v3845_v21  ;;  %s4058_s30 = smov 48   ;;  %vm1973_vm0 = vcmask 258240   ;;  %vm2930_vm1 = vcmask 523264  }
 0x13f   : > { %1148 = vadd.xlane.f32.xlu0 %v1147_v7  ;;  %3850 = vmatprep.subr.bf16.mxu1 %v3849_v23 }
 0x140   : > { %s4858_s10 = scalar_lea.vmem %s4857_s27, %s4214_s7  ;;  %s4051_s27 = smov 96  }
 0x141   : > { %v3494_v31 = vld [vmem:[%s4858_s10] ss:$0 sm:$0xff]  ;;  %s4860_s0 = scalar_lea.vmem %s4859_s17, %s4214_s7  ;;  %s4862_s13 = scalar_lea.vmem %s4861_s28, %s4214_s7 }
 0x142   : > { %3852 = vmatpush3.bf16.msra.mxu1 %v3849_v23  ;;  %v3495_v33 = vld [vmem:[%s4860_s0] ss:$0 sm:$0xff]  ;;  %s4052_s10 = smov 112   ;;  %s4055_s17 = smov 80  }
 0x143   : > { %3681 = vmatprep.subr.mxu1 %v4048_v40  ;;  %v3496_v41 = vld [vmem:[%s4862_s13] ss:$0 sm:$0xff]  ;;  %s4056_s0 = smov 72   ;;  %s4059_s28 = smov 40  }
 0x144   : > { %s4060_s13 = smov 56  }
 0x1c8   : > { %v1145_v8 = vpop.xlane.xlu0 %1144 }
 0x1c9   : > { %v1151_v9 = vmul.f32 0.03125, %v1145_v8 }
 0x1cb   : > { %v1153_v10 = vsub.f32 %v4415_v4, %v1151_v9 }
 0x1cc   : > { %v1149_v11 = vpop.xlane.xlu0 %1148 }
 0x1cd   : > { %v1152_v12 = vmul.f32 0.03125, %v1149_v11  ;;  %v1155_v13 = vmul.f32 %v1153_v10, %v1153_v10 }
 0x1cf   : > { %v1154_v14 = vsub.f32 %v4417_v5, %v1152_v12  ;;  %v1157_v15 = vsel %vm1142_vm5, %v1155_v13, 0.0 }
 0x1d0   : > { %1158 = vadd.xlane.f32.xlu1 %v1157_v15 }
 0x1d1   : > { %v1156_v16 = vmul.f32 %v1154_v14, %v1154_v14 }
 0x1d3   : > { %v1160_v17 = vsel %vm1146_vm6, %v1156_v16, 0.0 }
 0x1d4   : > { %1161 = vadd.xlane.f32.xlu1 %v1160_v17 }
 0x25d   : > { %v1159_v24 = vpop.xlane.xlu1 %1158 }
 0x25e   : > { %v1163_v25 = vmul.f32 0.03125, %v1159_v24 }
 0x260   : > { %v1165_v26 = vadd.f32 1e-06, %v1163_v25 }
 0x261   : > { %v1162_v27 = vpop.xlane.xlu1 %1161 }
 0x262   : > { %3932 = vrsqrt.f32 %v1165_v26  ;;  %v1164_v28 = vmul.f32 0.03125, %v1162_v27 }
 0x264   : > { %v1166_v29 = vadd.f32 1e-06, %v1164_v28 }
 0x266   : > { %3934 = vrsqrt.f32 %v1166_v29 }
 0x26c   : > { %v3933_v30 = vpop.eup %3932 }
 0x26d   : > { %v1169_v32 = vmul.f32 %v3933_v30, %v1153_v10 }
 0x26f   : > { %v1177_v34 = vmul.f32 %v3494_v31, %v1169_v32 }
 0x270   : > { %v3935_v35 = vpop.eup %3934 }
 0x271   : > { %v1170_v36 = vmul.f32 %v3935_v35, %v1154_v14  ;;  %v1185_v37 = vadd.f32 %v3495_v33, %v1177_v34 }
 0x273   : > { %v1178_v38 = vmul.f32 %v3494_v31, %v1170_v36  ;;  %3678 = vmatprep.mubr.msk.f32.mxu1 %vm1142_vm5, %v1185_v37 }
 0x275   : > { %v1186_v39 = vadd.f32 %v3495_v33, %v1178_v38 }
 0x277   : > { %3679 = vmatmul.mubr.msk.f32.vlgmr.msra.gmra.mrb[0].mxu1 %vm1142_vm5, %v1186_v39 }
 0x278   : > { %3683 = vmatprep.mubr.msk.f32.mxu1 %vm4049_vm7, %v4048_v40 }
 0x34a   : > { %v3680_v42 = vpop.f32.mrb[0].mxu1 }
 0x34b   : > { %v1270_v43 = vpop.f32.mrb[1].mxu1  ;;  %v1276_v46 = vadd.f32 %v3680_v42, %v3496_v41 }
 0x34c   : > { %v4454_v44 = vadd.f32 %v3496_v41, %v1270_v43 }
 0x34d   : > { %v1983_v47 = vrot.slane %v1276_v46, 5  ;;  %v1975_v49 = vmul.f32 0.35355338, %v1276_v46 }
 0x34e   : > { %1455 = vrot.lane.b32.xlu1 %v4454_v44, %s4050_s1  ;;  %1281 = vrot.lane.b32.xlu0 %v4454_v44, %s4051_s27  ;;  %v1279_v45 = vmul.f32 0.35355338, %v4454_v44  ;;  %v1982_v48 = vrot.slane %v4454_v44, 5 }
 0x34f   : > { %v1979_v51 = vrot.slane %v1975_v49, 5 }
 0x350   : > { %v4461_v50 = vsel %vm1977_vm8, %v1982_v48, %v1983_v47  ;;  %v1978_v52 = vrot.slane %v1279_v45, 5 }
 0x352   : > { %1627 = vrot.lane.b32.xlu0 %v1279_v45, %s4052_s10  ;;  %1453 = vrot.lane.b32.xlu1 %v1279_v45, %s4053_s21  ;;  %v1980_v53 = vsel %vm1977_vm8, %v1978_v52, %v1979_v51 }
 0x356   : > { %1801 = vrot.lane.b32.xlu0 %v1279_v45, %s4054_s26  ;;  %1629 = vrot.lane.b32.xlu1 %v4454_v44, %s4055_s17 }
 0x35a   : > { %2154 = vrot.lane.b32.xlu0 %v4461_v50, %s4050_s1  ;;  %1803 = vrot.lane.b32.xlu1 %v4454_v44, %s4056_s0  ;;  %s4061_s1 = smov 8  }
 0x35e   : > { %2327 = vrot.lane.b32.xlu0 %v4461_v50, %s4055_s17  ;;  %1985 = vrot.lane.b32.xlu1 %v4461_v50, %s4051_s27  ;;  %s4062_s27 = smov 16   ;;  %s4865_s17 = scalar_lea.vmem %s4797_s11, %s4214_s7 }
 0x362   : > { %2500 = vrot.lane.b32.xlu0 %v4461_v50, %s4056_s0  ;;  %2152 = vrot.lane.b32.xlu1 %v1980_v53, %s4053_s21  ;;  %s4863_s21 = sld [smem:[#allocation21_spill]] }
 0x366   : > { %2325 = vrot.lane.b32.xlu1 %v1980_v53, %s4052_s10 }
 0x36a   : > { %2498 = vrot.lane.b32.xlu1 %v1980_v53, %s4054_s26  ;;  %s4864_s26 = scalar_lea.vmem %s4863_s21, %s4214_s7 }
 0x3c0   : > { %v1456_v54 = vpop.permute.xlu1 %1455  ;;  %v1282_v55 = vpop.permute.xlu0 %1281 }
 0x3c1   : > { %3682 = vmatpush3.xpose.msk.msra.mxu1 %vm1283_vm9, %v1282_v55  ;;  %3692 = vmatpush3.xpose.msk.msra.mxu0 %vm1283_vm9, %v1456_v54 }
 0x3c2   : > { %3701 = vmatprep.subr.mxu0 %v4048_v40  ;;  %3686 = vmatprep.subr.mxu1 %v4048_v40 }
 0x3c4   : > { %v1628_v56 = vpop.permute.xlu0 %1627  ;;  %v1454_v57 = vpop.permute.xlu1 %1453  ;;  %3684 = vmatmul.mubr.msk.f32.vlgmr.msra.gmra.mrb[2].mxu1 %vm1283_vm9, %v1279_v45 }
 0x3c5   : > { %3694 = vmatmul.mubr.msk.f32.vlgmr.msra.gmra.mrb[0].mxu0 %vm1283_vm9, %v1454_v57  ;;  %3688 = vmatprep.mubr.msk.f32.mxu1 %vm4049_vm7, %v4048_v40 }
 0x3c6   : > { %3703 = vmatprep.mubr.msk.f32.mxu0 %vm4049_vm7, %v4048_v40 }
 0x3c8   : > { %v1630_v58 = vpop.permute.xlu1 %1629  ;;  %v1802_v59 = vpop.permute.xlu0 %1801 }
 0x3c9   : > { %3702 = vmatpush3.xpose.msk.msra.mxu0 %vm1283_vm9, %v1630_v58 }
 0x3ca   : > { %3711 = vmatprep.subr.mxu0 %v4048_v40 }
 0x3cc   : > { %3704 = vmatmul.mubr.msk.f32.vlgmr.msra.gmra.mrb[2].mxu0 %vm1283_vm9, %v1628_v56  ;;  %v1804_v60 = vpop.permute.xlu1 %1803  ;;  %v2155_v61 = vpop.permute.xlu0 %2154 }
 0x3cd   : > { %3712 = vmatpush3.xpose.msk.msra.mxu0 %vm1283_vm9, %v1804_v60  ;;  %3713 = vmatprep.mubr.msk.f32.mxu0 %vm4049_vm7, %v4048_v40 }
 0x3ce   : > { %3721 = vmatprep.subr.mxu0 %v4048_v40 }
 0x3d0   : > { %3714 = vmatmul.mubr.msk.f32.vlgmr.msra.gmra.mrb[4].mxu0 %vm1283_vm9, %v1802_v59  ;;  %v1986_v62 = vpop.permute.xlu1 %1985  ;;  %v2328_v0 = vpop.permute.xlu0 %2327 }
 0x3d1   : > { %3722 = vmatpush3.xpose.msk.msra.mxu0 %vm1283_vm9, %v1986_v62  ;;  %3723 = vmatprep.mubr.msk.f32.mxu0 %vm4049_vm7, %v4048_v40 }
 0x3d2   : > { %3731 = vmatprep.subr.mxu0 %v4048_v40 }
 0x3d4   : > { %v2153_v63 = vpop.permute.xlu1 %2152  ;;  %3724 = vmatmul.mubr.msk.f32.vlgmr.msra.gmra.mrb[6].mxu0 %vm1283_vm9, %v1980_v53  ;;  %v2501_v2 = vpop.permute.xlu0 %2500 }
 0x3d5   : > { %3732 = vmatpush3.xpose.msk.msra.mxu0 %vm1283_vm9, %v2155_v61  ;;  %3733 = vmatprep.mubr.msk.f32.mxu0 %vm4049_vm7, %v4048_v40 }
 0x3d6   : > { %3741 = vmatprep.subr.mxu0 %v4048_v40 }
 0x3d8   : > { %3734 = vmatmul.mubr.msk.f32.vlgmr.msra.gmra.mrb[8].mxu0 %vm1283_vm9, %v2153_v63  ;;  %v2326_v1 = vpop.permute.xlu1 %2325 }
 0x3d9   : > { %3742 = vmatpush3.xpose.msk.msra.mxu0 %vm1283_vm9, %v2328_v0  ;;  %3743 = vmatprep.mubr.msk.f32.mxu0 %vm4049_vm7, %v4048_v40 }
 0x3da   : > { %3751 = vmatprep.subr.mxu0 %v4048_v40 }
 0x3dc   : > { %3744 = vmatmul.mubr.msk.f32.vlgmr.msra.gmra.mrb[10].mxu0 %vm1283_vm9, %v2326_v1  ;;  %v2499_v3 = vpop.permute.xlu1 %2498 }
 0x3dd   : > { %3752 = vmatpush3.xpose.msk.msra.mxu0 %vm1283_vm9, %v2501_v2  ;;  %3753 = vmatprep.mubr.msk.f32.mxu0 %vm4049_vm7, %v4048_v40 }
 0x3e0   : > { %3754 = vmatmul.mubr.msk.f32.vlgmr.msra.gmra.mrb[12].mxu0 %vm1283_vm9, %v2499_v3 }
 0x497   : > { %v1355_v6 = vpop.f32.mrb[2].mxu1 }
 0x498   : > { %v3685_v7 = vpop.f32.mrb[3].mxu1  ;;  %v1527_v8 = vpop.f32.mrb[0].mxu0  ;;  %v1360_v9 = vsel %vm1359_vm10, %v1355_v6, -inf }
 0x499   : > { %v3695_v10 = vpop.f32.mrb[1].mxu0  ;;  %1361 = vmax.xlane.f32.xlu0 %v1360_v9  ;;  %v1531_v11 = vsel %vm1359_vm10, %v1527_v8, -inf }
 0x49a   : > { %1532 = vmax.xlane.f32.xlu1 %v1531_v11 }
 0x49f   : > { %v4507_v12 = vpop.f32.mrb[2].mxu0 }
 0x4a0   : > { %v3705_v13 = vpop.f32.mrb[3].mxu0  ;;  %v1705_v14 = vsel %vm1359_vm10, %v4507_v12, -inf }
 0x4a1   : > { %1706 = vmax.xlane.f32.xlu0 %v1705_v14 }
 0x4a3   : > { %v1875_v15 = vpop.f32.mrb[4].mxu0 }
 0x4a4   : > { %v3715_v16 = vpop.f32.mrb[5].mxu0  ;;  %v1879_v17 = vsel %vm1359_vm10, %v1875_v15, -inf }
 0x4a5   : > { %1880 = vmax.xlane.f32.xlu0 %v1879_v17 }
 0x4a7   : > { %v2057_v18 = vpop.f32.mrb[6].mxu0 }
 0x4a8   : > { %v3725_v19 = vpop.f32.mrb[7].mxu0  ;;  %v2061_v20 = vsel %vm1359_vm10, %v2057_v18, -inf }
 0x4a9   : > { %2062 = vmax.xlane.f32.xlu0 %v2061_v20 }
 0x4ab   : > { %v2226_v21 = vpop.f32.mrb[8].mxu0 }
 0x4ac   : > { %v3735_v22 = vpop.f32.mrb[9].mxu0  ;;  %v2230_v23 = vsel %vm1359_vm10, %v2226_v21, -inf }
 0x4ad   : > { %2231 = vmax.xlane.f32.xlu1 %v2230_v23 }
 0x4af   : > { %v2399_v24 = vpop.f32.mrb[10].mxu0 }
 0x4b0   : > { %v3745_v25 = vpop.f32.mrb[11].mxu0  ;;  %v2403_v26 = vsel %vm1359_vm10, %v2399_v24, -inf }
 0x4b1   : > { %2404 = vmax.xlane.f32.xlu0 %v2403_v26 }
 0x4b3   : > { %v4515_v27 = vpop.f32.mrb[12].mxu0 }
 0x4b4   : > { %v3755_v28 = vpop.f32.mrb[13].mxu0  ;;  %v2576_v29 = vsel %vm1359_vm10, %v4515_v27, -inf }
 0x4be   : > { %1372 = vrot.lane.b32.xlu1 %v4454_v44, %s4057_s3 }
 0x4e2   : > { %2577 = vmax.xlane.f32.xlu1 %v2576_v29 }
 0x4f3   : > { %1718 = vrot.lane.b32.xlu1 %v4454_v44, %s4058_s30 }
 0x4f7   : > { %1892 = vrot.lane.b32.xlu1 %v4454_v44, %s4059_s28 }
 0x4fb   : > { %2074 = vrot.lane.b32.xlu1 %v4461_v50, %s4057_s3  ;;  %s4866_s3 = scalar_lea.vmem %s4798_s12, %s4214_s7 }
 0x526   : > { %v1362_v30 = vpop.xlane.xlu0 %1361 }
 0x527   : > { %v1363_v31 = vsub.f32 %v1355_v6, %v1362_v30  ;;  %v1533_v32 = vpop.xlane.xlu1 %1532 }
 0x528   : > { %v1534_v33 = vsub.f32 %v1527_v8, %v1533_v32 }
 0x529   : > { %v1364_v34 = vmul.f32 1.442695, %v1363_v31 }
 0x52a   : > { %v1535_v35 = vmul.f32 1.442695, %v1534_v33 }
 0x52b   : > { %3936 = vpow2.f32 %v1364_v34 }
 0x52c   : > { %3938 = vpow2.f32 %v1535_v35 }
 0x52e   : > { %v1707_v36 = vpop.xlane.xlu0 %1706 }
 0x52f   : > { %v1708_v51 = vsub.f32 %v4507_v12, %v1707_v36 }
 0x531   : > { %v1709_v53 = vmul.f32 1.442695, %v1708_v51  ;;  %v2673_v51 = vld [vmem:[%s4237_s19] sm:$0xff] }
 0x532   : > { %v1881_v37 = vpop.xlane.xlu0 %1880 }
 0x533   : > { %v1882_v38 = vsub.f32 %v1875_v15, %v1881_v37 }
 0x535   : > { %v4525_v39 = vpop.eup %3936  ;;  %v1883_v41 = vmul.f32 1.442695, %v1882_v38 }
 0x536   : > { %v4527_v42 = vpop.eup %3938  ;;  %v1366_v43 = vsel %vm1359_vm10, %v4525_v39, 0.0  ;;  %v2063_v52 = vpop.xlane.xlu0 %2062 }
 0x537   : > { %3940 = vpow2.f32 %v1883_v41  ;;  %1367 = vadd.xlane.f32.xlu0 %v1366_v43  ;;  %v1537_v45 = vsel %vm1359_vm10, %v4527_v42, 0.0  ;;  %v2064_v54 = vsub.f32 %v2057_v18, %v2063_v52  ;;  %v2674_v52 = vld [vmem:[%s4237_s19 + $0x8] sm:$0xff] }
 0x538   : > { %1538 = vadd.xlane.f32.xlu1 %v1537_v45  ;;  %3942 = vpow2.f32 %v1709_v53 }
 0x539   : > { %v2065_v56 = vmul.f32 1.442695, %v2064_v54  ;;  %v3853_v54 = vpack.c.bf16 %v2674_v52, %v2673_v51  ;;  %v2916_v51 = vld [vmem:[%s4264_s4 + $0x8] sm:$0xff] }
 0x53a   : > { %v2232_v46 = vpop.xlane.xlu1 %2231 }
 0x53b   : > { %3944 = vpow2.f32 %v2065_v56  ;;  %v2233_v58 = vsub.f32 %v2226_v21, %v2232_v46  ;;  %v2676_v56 = vld [vmem:[%s4237_s19 + $0x18] sm:$0xff]  ;;  %3854 = vmatprep.subr.bf16.mxu0 %v3853_v54 }
 0x53c   : > { %3856 = vmatpush3.bf16.msra.mxu0 %v3853_v54  ;;  %v2918_v54 = vld [vmem:[%s4264_s4 + $0x18] sm:$0xff] }
 0x53d   : > { %v2234_v60 = vmul.f32 1.442695, %v2233_v58 }
 0x53e   : > { %v1373_v47 = vpop.permute.xlu1 %1372  ;;  %v2405_v55 = vpop.xlane.xlu0 %2404 }
 0x53f   : > { %3687 = vmatpush3.msk.msra.mxu1 %vm1378_vm11, %v1373_v47  ;;  %v2406_v57 = vsub.f32 %v2399_v24, %v2405_v55  ;;  %v2675_v55 = vld [vmem:[%s4237_s19 + $0x10] sm:$0xff]  ;;  %s4869_s19 = sld [smem:[#allocation10_spill]] }
 0x540   : > { %3696 = vmatprep.subr.mxu1 %v4048_v40  ;;  %v3857_v58 = vpack.c.bf16 %v2676_v56, %v2675_v55  ;;  %v2919_v56 = vld [vmem:[%s4264_s4 + $0x20] sm:$0xff] }
 0x541   : > { %v4535_v48 = vpop.eup %3940  ;;  %v2407_v59 = vmul.f32 1.442695, %v2406_v57 }
 0x542   : > { %v1885_v49 = vsel %vm1359_vm10, %v4535_v48, 0.0  ;;  %v3943_v61 = vpop.eup %3942  ;;  %3858 = vmatprep.subr.bf16.mxu0 %v3857_v58 }
 0x543   : > { %1886 = vadd.xlane.f32.xlu1 %v1885_v49  ;;  %3946 = vpow2.f32 %v2407_v59  ;;  %3860 = vmatpush3.bf16.msra.mxu0 %v3857_v58 }
 0x544   : > { %3948 = vpow2.f32 %v2234_v60 }
 0x545   : > { %v4543_v62 = vpop.eup %3944  ;;  %p3549_p5 = scmp.ne.s32.totalorder %s4869_s19, 1 }
 0x546   : > { %v2067_v0 = vsel %vm1359_vm10, %v4543_v62, 0.0  ;;  %s4870_s10 = sld [smem:[#allocation25_spill]] (!%p3549_p5)  ;;  %s4873_s19 = sld [smem:[#allocation26_spill]] (!%p3549_p5)  ;;  %vm3157_vm2 = vcmask (!%p3549_p5), 57344   ;;  %vm3159_vm3 = vcmask (!%p3549_p5), 62469  }
 0x54d   : > { %1544 = vrot.lane.b32.xlu0 %v4454_v44, %s4060_s13  ;;  %v1711_v44 = vsel %vm1359_vm10, %v3943_v61, 0.0  ;;  %v4547_v1 = vpop.eup %3946 }
 0x54e   : > { %v2409_v6 = vsel %vm1359_vm10, %v4547_v1, 0.0  ;;  %v4552_v7 = vpop.eup %3948 }
 0x54f   : > { %v2236_v8 = vsel %vm1359_vm10, %v4552_v7, 0.0 }
 0x554   : > { %2243 = vrot.lane.b32.xlu1 %v4461_v50, %s4060_s13  ;;  %s4867_s13 = scalar_lea.vmem %s4800_s14, %s4214_s7 }
 0x56c   : > { %1712 = vadd.xlane.f32.xlu0 %v1711_v44 }
 0x56f   : > { %v2578_v63 = vpop.xlane.xlu1 %2577 }
 0x570   : > { %v2579_v2 = vsub.f32 %v4515_v27, %v2578_v63  ;;  %2068 = vadd.xlane.f32.xlu0 %v2067_v0 }
 0x572   : > { %v2580_v3 = vmul.f32 1.442695, %v2579_v2 }
 0x573   : > { %v1719_v11 = vpop.permute.xlu1 %1718 }
 0x574   : > { %3950 = vpow2.f32 %v2580_v3  ;;  %2410 = vadd.xlane.f32.xlu0 %v2409_v6 }
 0x577   : > { %v1893_v12 = vpop.permute.xlu1 %1892 }
 0x578   : > { %2237 = vadd.xlane.f32.xlu1 %v2236_v8 }
 0x57b   : > { %v2075_v13 = vpop.permute.xlu1 %2074 }
 0x57e   : > { %v4556_v9 = vpop.eup %3950 }
 0x57f   : > { %v2582_v10 = vsel %vm1359_vm10, %v4556_v9, 0.0 }
 0x580   : > { %2583 = vadd.xlane.f32.xlu0 %v2582_v10  ;;  %v3538_v10 = vld [vmem:[%s4864_s26] ss:$0 sm:$0xff] }
 0x589   : > { %2589 = vrot.lane.b32.xlu1 %v4461_v50, %s4059_s28 }
 0x596   : > { %2416 = vrot.lane.b32.xlu0 %v4461_v50, %s4058_s30  ;;  %s4871_s30 = sld [smem:[#allocation23_spill]] (!%p3549_p5) }
 0x5c4   : > { %v1368_v14 = vpop.xlane.xlu0 %1367 }
 0x5c5   : > { %3952 = vrcp.f32 %v1368_v14  ;;  %v1539_v15 = vpop.xlane.xlu1 %1538 }
 0x5c6   : > { %3954 = vrcp.f32 %v1539_v15 }
 0x5c8   : > { %v1545_v50 = vpop.permute.xlu0 %1544 }
 0x5cf   : > { %v3953_v16 = vpop.eup %3952 }
 0x5d0   : > { %v3955_v17 = vpop.eup %3954  ;;  %v1370_v18 = vmul.f32 %v3953_v16, %v4525_v39  ;;  %v1887_v19 = vpop.xlane.xlu1 %1886 }
 0x5d1   : > { %v1541_v20 = vmul.f32 %v3955_v17, %v4527_v42  ;;  %3956 = vrcp.f32 %v1887_v19 }
 0x5d2   : > { %1371 = vst.msk [vmem:[%s4274_s5] sm:$0x1f] %vm1359_vm10, %v1370_v18  ;;  %3689 = vmatmul.mubr.msk.f32.vlgmr.msra.gmra.mrb[4].mxu1 %vm1374_vm12, %v1370_v18 }
 0x5d3   : > { %3505 = vst.msk [vmem:[%s4274_s5 + $0x8] sm:$0x1f] %vm1359_vm10, %v1541_v20  ;;  %3697 = vmatpush3.msk.msra.mxu1 %vm1378_vm11, %v1545_v50  ;;  %3698 = vmatprep.mubr.msk.f32.mxu1 %vm4049_vm7, %v4048_v40 }
 0x5d4   : > { %3706 = vmatprep.subr.mxu1 %v4048_v40  ;;  %v2244_v25 = vpop.permute.xlu1 %2243 }
 0x5d6   : > { %3699 = vmatmul.mubr.msk.f32.vlgmr.msra.gmra.mrb[6].mxu1 %vm1374_vm12, %v1541_v20 }
 0x5d7   : > { %3707 = vmatpush3.msk.msra.mxu1 %vm1378_vm11, %v1719_v11  ;;  %3708 = vmatprep.mubr.msk.f32.mxu1 %vm4049_vm7, %v4048_v40 }
 0x5d8   : > { %3716 = vmatprep.subr.mxu1 %v4048_v40 }
 0x5db   : > { %v3957_v21 = vpop.eup %3956 }
 0x5dc   : > { %v1889_v22 = vmul.f32 %v3957_v21, %v4535_v48 }
 0x5de   : > { %3515 = vst.msk [vmem:[%s4274_s5 + $0x18] sm:$0x1f] %vm1359_vm10, %v1889_v22 }
 0x5f9   : > { %v1713_v23 = vpop.xlane.xlu0 %1712 }
 0x5fa   : > { %3958 = vrcp.f32 %v1713_v23 }
 0x5fd   : > { %v2069_v24 = vpop.xlane.xlu0 %2068 }
 0x5fe   : > { %3960 = vrcp.f32 %v2069_v24 }
 0x601   : > { %v2411_v26 = vpop.xlane.xlu0 %2410 }
 0x602   : > { %3962 = vrcp.f32 %v2411_v26  ;;  %v2813_v26 = vld [vmem:[%s4254_s8] sm:$0xff] }
 0x604   : > { %v3959_v27 = vpop.eup %3958 }
 0x605   : > { %v1715_v28 = vmul.f32 %v3959_v27, %v3943_v61  ;;  %v2238_v29 = vpop.xlane.xlu1 %2237  ;;  %v2814_v27 = vld [vmem:[%s4254_s8 + $0x8] sm:$0xff] }
 0x606   : > { %3964 = vrcp.f32 %v2238_v29  ;;  %v2815_v29 = vld [vmem:[%s4254_s8 + $0x10] sm:$0xff] }
 0x607   : > { %3510 = vst.msk [vmem:[%s4274_s5 + $0x10] sm:$0x1f] %vm1359_vm10, %v1715_v28  ;;  %3709 = vmatmul.mubr.msk.f32.vlgmr.msra.gmra.mrb[8].mxu1 %vm1374_vm12, %v1715_v28  ;;  %v3861_v28 = vpack.c.bf16 %v2814_v27, %v2813_v26 }
 0x608   : > { %v3961_v30 = vpop.eup %3960  ;;  %3717 = vmatpush3.msk.msra.mxu1 %vm1378_vm11, %v1893_v12  ;;  %3718 = vmatprep.mubr.msk.f32.mxu1 %vm4049_vm7, %v4048_v40 }
 0x609   : > { %v2071_v31 = vmul.f32 %v3961_v30, %v4543_v62  ;;  %3726 = vmatprep.subr.mxu1 %v4048_v40  ;;  %v2590_v38 = vpop.permute.xlu1 %2589  ;;  %v2816_v30 = vld [vmem:[%s4254_s8 + $0x18] sm:$0xff] }
 0x60b   : > { %3520 = vst.msk [vmem:[%s4274_s5 + $0x20] sm:$0x1f] %vm1359_vm10, %v2071_v31  ;;  %3719 = vmatmul.mubr.msk.f32.vlgmr.msra.gmra.mrb[10].mxu1 %vm1374_vm12, %v1889_v22 }
 0x60c   : > { %v3963_v32 = vpop.eup %3962  ;;  %3727 = vmatpush3.msk.msra.mxu1 %vm1378_vm11, %v2075_v13  ;;  %3728 = vmatprep.mubr.msk.f32.mxu1 %vm4049_vm7, %v4048_v40 }
 0x60d   : > { %v2413_v33 = vmul.f32 %v3963_v32, %v4547_v1  ;;  %v2584_v34 = vpop.xlane.xlu0 %2583  ;;  %3736 = vmatprep.subr.mxu1 %v4048_v40 }
 0x60e   : > { %3966 = vrcp.f32 %v2584_v34 }
 0x60f   : > { %3530 = vst.msk [vmem:[%s4274_s5 + $0x30] sm:$0x1f] %vm1359_vm10, %v2413_v33  ;;  %3729 = vmatmul.mubr.msk.f32.vlgmr.msra.gmra.mrb[12].mxu1 %vm1374_vm12, %v2071_v31  ;;  %v3865_v31 = vpack.c.bf16 %v2816_v30, %v2815_v29  ;;  %v3066_v30 = vld [vmem:[%s4870_s10] sm:$0xff] (!%p3549_p5) }
 0x610   : > { %v3965_v35 = vpop.eup %3964  ;;  %3737 = vmatpush3.msk.msra.mxu1 %vm1378_vm11, %v2244_v25  ;;  %3738 = vmatprep.mubr.msk.f32.mxu1 %vm4049_vm7, %v4048_v40 }
 0x611   : > { %v2240_v36 = vmul.f32 %v3965_v35, %v4552_v7  ;;  %v2417_v37 = vpop.permute.xlu0 %2416  ;;  %3746 = vmatprep.subr.mxu1 %v4048_v40 }
 0x613   : > { %3525 = vst.msk [vmem:[%s4274_s5 + $0x28] sm:$0x1f] %vm1359_vm10, %v2240_v36  ;;  %3739 = vmatmul.mubr.msk.f32.vlgmr.msra.gmra.mrb[14].mxu1 %vm1374_vm12, %v2240_v36 }
 0x614   : > { %3747 = vmatpush3.msk.msra.mxu1 %vm1378_vm11, %v2417_v37  ;;  %3748 = vmatprep.mubr.msk.f32.mxu1 %vm4049_vm7, %v4048_v40 }
 0x615   : > { %3756 = vmatprep.subr.mxu1 %v4048_v40 }
 0x617   : > { %3749 = vmatmul.mubr.msk.f32.vlgmr.msra.gmra.mrb[16].mxu1 %vm1374_vm12, %v2413_v33 }
 0x618   : > { %v3967_v39 = vpop.eup %3966  ;;  %3757 = vmatpush3.msk.msra.mxu1 %vm1378_vm11, %v2590_v38  ;;  %3758 = vmatprep.mubr.msk.f32.mxu1 %vm4049_vm7, %v4048_v40 }
 0x619   : > { %v2586_v41 = vmul.f32 %v3967_v39, %v4556_v9  ;;  %3862 = vmatprep.subr.bf16.mxu1 %v3861_v28  ;;  %v3541_v39 = vld [vmem:[%s4865_s17] ss:$0 sm:$0xff] }
 0x61b   : > { %3535 = vst.msk [vmem:[%s4274_s5 + $0x38] sm:$0x1f] %vm1359_vm10, %v2586_v41  ;;  %3759 = vmatmul.mubr.msk.f32.vlgmr.msra.gmra.mrb[18].mxu1 %vm1374_vm12, %v2586_v41  ;;  %s4063_s5 = smov 24  }
 0x61c   : > { %3864 = vmatpush3.bf16.msra.mxu1 %v3861_v28 }
 0x61d   : > { %3866 = vmatprep.subr.bf16.mxu1 %v3865_v31 }
 0x620   : > { %3868 = vmatpush3.bf16.msra.mxu1 %v3865_v31  ;;  %v3067_v31 = vld [vmem:[%s4870_s10 + $0x8] sm:$0xff] (!%p3549_p5) }
 0x6a5   : > { %v1447_v42 = vpop.f32.mrb[4].mxu1 }
 0x6a6   : > { %1452 = vst.msk [vmem:[%s4289_s9] sm:$0x1f] %vm1451_vm13, %v1447_v42  ;;  %v3690_v43 = vpop.f32.mrb[5].mxu1  ;;  %v3542_v42 = vld [vmem:[%s4866_s3] ss:$0 sm:$0xff] }
 0x6a9   : > { %v1617_v45 = vpop.f32.mrb[6].mxu1 }
 0x6aa   : > { %1622 = vrot.lane.b32.xlu0 %v1617_v45, %s4061_s1  ;;  %v3700_v40 = vpop.f32.mrb[7].mxu1 }
 0x6da   : > { %v1791_v46 = vpop.f32.mrb[8].mxu1 }
 0x6db   : > { %1796 = vrot.lane.b32.xlu0 %v1791_v46, %s4062_s27  ;;  %v3710_v47 = vpop.f32.mrb[9].mxu1 }
 0x6de   : > { %v1965_v48 = vpop.f32.mrb[10].mxu1 }
 0x6df   : > { %1970 = vrot.lane.b32.xlu0 %v1965_v48, %s4063_s5  ;;  %v3720_v49 = vpop.f32.mrb[11].mxu1 }
 0x6e0   : > { %v2915_v49 = vld [vmem:[%s4264_s4] sm:$0xff] }
 0x6e1   : > { %v3869_v52 = vpack.c.bf16 %v2916_v51, %v2915_v49 }
 0x6e2   : > { %v2147_v53 = vpop.f32.mrb[12].mxu1 }
 0x6e3   : > { %2151 = vst.msk [vmem:[%s4289_s9 + $0x5] sm:$0x1f] %vm1451_vm13, %v2147_v53  ;;  %v3730_v57 = vpop.f32.mrb[13].mxu1  ;;  %3870 = vmatprep.subr.bf16.mxu0 %v3869_v52  ;;  %v2917_v53 = vld [vmem:[%s4264_s4 + $0x10] sm:$0xff] }
 0x6e4   : > { %v3873_v55 = vpack.c.bf16 %v2918_v54, %v2917_v53  ;;  %v2920_v57 = vld [vmem:[%s4264_s4 + $0x28] sm:$0xff]  ;;  %v3552_v54 = vld [vmem:[%s4873_s19] ss:$0 sm:$0xff] (!%p3549_p5) }
 0x6e5   : > { %v3877_v58 = vpack.c.bf16 %v2920_v57, %v2919_v56 }
 0x6e6   : > { %v2316_v59 = vpop.f32.mrb[14].mxu1 }
 0x6e7   : > { %2321 = vrot.lane.b32.xlu1 %v2316_v59, %s4061_s1  ;;  %v3740_v60 = vpop.f32.mrb[15].mxu1  ;;  %v2921_v59 = vld [vmem:[%s4264_s4 + $0x30] sm:$0xff] }
 0x6e8   : > { %v2922_v60 = vld [vmem:[%s4264_s4 + $0x38] sm:$0xff]  ;;  %s4872_s4 = sld [smem:[#allocation24_spill]] (!%p3549_p5) }
 0x6ea   : > { %v2489_v61 = vpop.f32.mrb[16].mxu1 }
 0x6eb   : > { %2494 = vrot.lane.b32.xlu1 %v2489_v61, %s4062_s27  ;;  %v3750_v44 = vpop.f32.mrb[17].mxu1  ;;  %v3881_v61 = vpack.c.bf16 %v2922_v60, %v2921_v59 }
 0x6ec   : > { %v3543_v44 = vld [vmem:[%s4867_s13] ss:$0 sm:$0xff] }
 0x6ee   : > { %v2662_v62 = vpop.f32.mrb[18].mxu1 }
 0x6ef   : > { %2667 = vrot.lane.b32.xlu1 %v2662_v62, %s4063_s5  ;;  %v3760_v63 = vpop.f32.mrb[19].mxu1  ;;  %s4868_s5 = scalar_lea.vmem %s4802_s16, %s4214_s7 }
 0x71c   : > { %v1623_v0 = vpop.permute.xlu0 %1622 }
 0x71d   : > { %1626 = vst.msk [vmem:[%s4289_s9] sm:$0x1f] %vm1625_vm14, %v1623_v0 }
 0x74d   : > { %v1797_v1 = vpop.permute.xlu0 %1796 }
 0x74e   : > { %1800 = vst.msk [vmem:[%s4289_s9] sm:$0x1f] %vm1799_vm15, %v1797_v1 }
 0x751   : > { %v1971_v2 = vpop.permute.xlu0 %1970 }
 0x752   : > { %1974 = vst.msk [vmem:[%s4289_s9] sm:$0x1f] %vm1973_vm0, %v1971_v2 }
 0x759   : > { %v2322_v3 = vpop.permute.xlu1 %2321 }
 0x75a   : > { %2324 = vst.msk [vmem:[%s4289_s9 + $0x5] sm:$0x1f] %vm1625_vm14, %v2322_v3 }
 0x75d   : > { %v2495_v6 = vpop.permute.xlu1 %2494 }
 0x75e   : > { %2497 = vst.msk [vmem:[%s4289_s9 + $0x5] sm:$0x1f] %vm1799_vm15, %v2495_v6 }
 0x761   : > { %v2668_v7 = vpop.permute.xlu1 %2667 }
 0x762   : > { %2670 = vst.msk [vmem:[%s4289_s9 + $0x5] sm:$0x1f] %vm1973_vm0, %v2668_v7 }
 0x769   : > { %v2671_v8 = vld [vmem:[%s4289_s9] sm:$0xff]  ;;  %v2672_v9 = vld [vmem:[%s4289_s9 + $0x8] sm:$0x3] }
 0x76a   : > { %3769 = vmatprep.mubr.msk.f32.mxu0 %vm1142_vm5, %v2671_v8 }
 0x76b   : > { %3770 = vmatmul.mubr.msk.f32.vlgmr.msra.gmra.mrb[14].mxu0 %vm1142_vm5, %v2672_v9 }
 0x76c   : > { %3872 = vmatpush3.bf16.msra.mxu0 %v3869_v52 }
 0x76d   : > { %3874 = vmatprep.subr.bf16.mxu0 %v3873_v55 }
 0x770   : > { %3876 = vmatpush3.bf16.msra.mxu0 %v3873_v55 }
 0x771   : > { %3878 = vmatprep.subr.bf16.mxu0 %v3877_v58 }
 0x774   : > { %3880 = vmatpush3.bf16.msra.mxu0 %v3877_v58 }
 0x775   : > { %3882 = vmatprep.subr.bf16.mxu0 %v3881_v61 }
 0x778   : > { %3884 = vmatpush3.bf16.msra.mxu0 %v3881_v61 }
 0x83e   : > { %v3771_v11 = vpop.f32.mrb[14].mxu0 }
 0x83f   : > { %v2762_v12 = vadd.f32 %v3771_v11, %v3538_v10  ;;  %v2756_v13 = vpop.f32.mrb[15].mxu0 }
 0x840   : > { %v2757_v14 = vadd.f32 %v3538_v10, %v2756_v13 }
 0x841   : > { %v4648_v15 = vadd.f32 %v2762_v12, %v4417_v5 }
 0x842   : > { %v4651_v16 = vadd.f32 %v2757_v14, %v4415_v4  ;;  %v3546_v14 = vld [vmem:[%s4868_s5] ss:$0 sm:$0xff] }
 0x843   : > { %2768 = vst.msk [vmem:[%s4279_s18 + $0x8] sm:$0x3] %vm1146_vm6, %v4648_v15  ;;  %v2774_v17 = vsel %vm1146_vm6, %v4648_v15, 0.0 }
 0x844   : > { %2767 = vst.msk [vmem:[%s4279_s18] sm:$0xff] %vm1142_vm5, %v4651_v16  ;;  %2775 = vadd.xlane.f32.xlu1 %v2774_v17  ;;  %v2771_v18 = vsel %vm1142_vm5, %v4651_v16, 0.0 }
 0x845   : > { %2772 = vadd.xlane.f32.xlu0 %v2771_v18 }
 0x8d1   : > { %v2776_v5 = vpop.xlane.xlu1 %2775 }
 0x8d2   : > { %v2778_v19 = vmul.f32 0.03125, %v2776_v5  ;;  %v2773_v4 = vpop.xlane.xlu0 %2772 }
 0x8d3   : > { %v2777_v20 = vmul.f32 0.03125, %v2773_v4 }
 0x8d4   : > { %v2780_v50 = vsub.f32 %v4648_v15, %v2778_v19 }
 0x8d5   : > { %v2779_v21 = vsub.f32 %v4651_v16, %v2777_v20 }
 0x8d6   : > { %v2782_v24 = vmul.f32 %v2780_v50, %v2780_v50 }
 0x8d7   : > { %v2781_v22 = vmul.f32 %v2779_v21, %v2779_v21 }
 0x8d8   : > { %v2786_v25 = vsel %vm1146_vm6, %v2782_v24, 0.0 }
 0x8d9   : > { %v2783_v23 = vsel %vm1142_vm5, %v2781_v22, 0.0 }
 0x8da   : > { %2784 = vadd.xlane.f32.xlu0 %v2783_v23 }
 0x8de   : > { %2787 = vadd.xlane.f32.xlu0 %v2786_v25 }
 0x967   : > { %v2785_v32 = vpop.xlane.xlu0 %2784 }
 0x968   : > { %v2789_v33 = vmul.f32 0.03125, %v2785_v32  ;;  %v3068_v32 = vld [vmem:[%s4870_s10 + $0x10] sm:$0xff] (!%p3549_p5) }
 0x96a   : > { %v2791_v34 = vadd.f32 1e-06, %v2789_v33  ;;  %v3885_v33 = vpack.c.bf16 (!%p3549_p5), %v3067_v31, %v3066_v30 }
 0x96b   : > { %v2788_v35 = vpop.xlane.xlu0 %2787 }
 0x96c   : > { %3968 = vrsqrt.f32 %v2791_v34  ;;  %v2790_v36 = vmul.f32 0.03125, %v2788_v35  ;;  %v3069_v34 = vld [vmem:[%s4870_s10 + $0x18] sm:$0xff] (!%p3549_p5)  ;;  %3886 = vmatprep.subr.bf16.mxu0 (!%p3549_p5), %v3885_v33 }
 0x96d   : > { %v3889_v35 = vpack.c.bf16 (!%p3549_p5), %v3069_v34, %v3068_v32 }
 0x96e   : > { %v2792_v37 = vadd.f32 1e-06, %v2790_v36 }
 0x970   : > { %3970 = vrsqrt.f32 %v2792_v37 }
 0x976   : > { %v3969_v38 = vpop.eup %3968 }
 0x977   : > { %v2795_v41 = vmul.f32 %v3969_v38, %v2779_v21 }
 0x979   : > { %v2803_v43 = vmul.f32 %v3541_v39, %v2795_v41 }
 0x97a   : > { %v3971_v45 = vpop.eup %3970 }
 0x97b   : > { %v2796_v40 = vmul.f32 %v3971_v45, %v2780_v50  ;;  %v2811_v46 = vadd.f32 %v3542_v42, %v2803_v43  ;;  %v3550_v45 = vld [vmem:[%s4871_s30] ss:$0 sm:$0xff] (!%p3549_p5) }
 0x97d   : > { %v2804_v47 = vmul.f32 %v3541_v39, %v2796_v40  ;;  %3780 = vmatprep.mubr.msk.f32.mxu1 %vm1142_vm5, %v2811_v46  ;;  %v3551_v46 = vld [vmem:[%s4872_s4] ss:$0 sm:$0xff] (!%p3549_p5) }
 0x97f   : > { %v2812_v48 = vadd.f32 %v3542_v42, %v2804_v47 }
 0x981   : > { %3781 = vmatmul.mubr.msk.f32.vlgmr.msra.gmra.mrb[20].mxu1 %vm1142_vm5, %v2812_v48 }
 0xa54   : > { %v3782_v62 = vpop.f32.mrb[20].mxu1 }
 0xa55   : > { %v2902_v63 = vadd.f32 %v3782_v62, %v3543_v44  ;;  %v2896_v0 = vpop.f32.mrb[21].mxu1 }
 0xa56   : > { %v2897_v1 = vadd.f32 %v3543_v44, %v2896_v0 }
 0xa57   : > { %v2908_v2 = vmul.f32 0.70710677, %v2902_v63  ;;  %v2906_v11 = vmul.f32 0.5, %v2902_v63 }
 0xa58   : > { %v2907_v3 = vmul.f32 0.70710677, %v2897_v1  ;;  %v2905_v9 = vmul.f32 0.5, %v2897_v1 }
 0xa59   : > { %3972 = verf.f32 %v2908_v2 }
 0xa5a   : > { %3974 = verf.f32 %v2907_v3 }
 0xa63   : > { %v3973_v6 = vpop.eup %3972 }
 0xa64   : > { %v3975_v7 = vpop.eup %3974  ;;  %v2912_v8 = vadd.f32 1.0, %v3973_v6 }
 0xa65   : > { %v2911_v10 = vadd.f32 1.0, %v3975_v7 }
 0xa66   : > { %v2914_v13 = vmul.f32 %v2912_v8, %v2906_v11 }
 0xa67   : > { %v2913_v12 = vmul.f32 %v2911_v10, %v2905_v9 }
 0xa69   : > { %3799 = vmatprep.mubr.msk.f32.mxu0 %vm2930_vm1, %v2913_v12 }
 0xa6a   : > { %3800 = vmatmul.mubr.msk.f32.vlgmr.msra.gmra.mrb[16].mxu0 %vm2930_vm1, %v2914_v13 }
 0xa6b   : > { %3888 = vmatpush3.bf16.msra.mxu0 (!%p3549_p5), %v3885_v33 }
 0xa6c   : > { %3890 = vmatprep.subr.bf16.mxu0 (!%p3549_p5), %v3889_v35 }
 0xa6f   : > { %3892 = vmatpush3.bf16.msra.mxu0 (!%p3549_p5), %v3889_v35 }
 0xb3d   : > { %v3801_v17 = vpop.f32.mrb[16].mxu0  ;;  %3021 = sbr.rel (%p3549_p5) target bundleno = 3417 (0xd59), region = 112 }
 0xb3e   : > { %v3009_v18 = vadd.f32 %v3801_v17, %v3546_v14  ;;  %v3003_v5 = vpop.f32.mrb[17].mxu0 }
 0xb3f   : > { %v3004_v19 = vadd.f32 %v3546_v14, %v3003_v5 }
 0xb40   : > { %v3013_v4 = vadd.f32 %v3009_v18, %v4648_v15 }
 0xb41   : > { %v3012_v20 = vadd.f32 %v3004_v19, %v4651_v16 }
 0xb42   : > { %3015 = vst.msk [vmem:[%s4284_s29 + $0x8] sm:$0x3] %vm1146_vm6, %v3013_v4  ;;  %3017 = vst.msk [vmem:[#allocation2 + $0x8] sm:$0x3] %vm1146_vm6, %v3013_v4  ;;  %v3027_v21 = vsel (!%p3549_p5), %vm1146_vm6, %v3013_v4, 0.0 }
 0xb43   : > { %3014 = vst.msk [vmem:[%s4284_s29] sm:$0xff] %vm1142_vm5, %v3012_v20  ;;  %3016 = vst.msk [vmem:[#allocation2] sm:$0xff] %vm1142_vm5, %v3012_v20  ;;  %v3024_v50 = vsel (!%p3549_p5), %vm1142_vm5, %v3012_v20, 0.0 }
 0xb44   : > { %3025 = vadd.xlane.f32.xlu0 %v3024_v50 }
 0xb48   : > { %3028 = vadd.xlane.f32.xlu0 %v3027_v21 }
 0xbd1   : > { %v3026_v15 = vpop.xlane.xlu0 %3025 }
 0xbd2   : > { %v3030_v22 = vmul.f32 0.03125, %v3026_v15 }
 0xbd4   : > { %v3032_v16 = vsub.f32 %v3012_v20, %v3030_v22 }
 0xbd5   : > { %v3029_v23 = vpop.xlane.xlu0 %3028 }
 0xbd6   : > { %v3031_v24 = vmul.f32 0.03125, %v3029_v23  ;;  %v3034_v25 = vmul.f32 %v3032_v16, %v3032_v16 }
 0xbd8   : > { %v3033_v26 = vsub.f32 %v3013_v4, %v3031_v24  ;;  %v3036_v27 = vsel %vm1142_vm5, %v3034_v25, 0.0 }
 0xbd9   : > { %3037 = vadd.xlane.f32.xlu1 %v3036_v27 }
 0xbda   : > { %v3035_v28 = vmul.f32 %v3033_v26, %v3033_v26 }
 0xbdc   : > { %v3039_v29 = vsel %vm1146_vm6, %v3035_v28, 0.0 }
 0xbdd   : > { %3040 = vadd.xlane.f32.xlu1 %v3039_v29 }
 0xc66   : > { %v3038_v36 = vpop.xlane.xlu1 %3037 }
 0xc67   : > { %v3042_v37 = vmul.f32 0.03125, %v3038_v36 }
 0xc69   : > { %v3044_v38 = vadd.f32 1e-06, %v3042_v37 }
 0xc6a   : > { %v3041_v39 = vpop.xlane.xlu1 %3040 }
 0xc6b   : > { %3976 = vrsqrt.f32 %v3044_v38  ;;  %v3043_v41 = vmul.f32 0.03125, %v3041_v39 }
 0xc6d   : > { %v3045_v42 = vadd.f32 1e-06, %v3043_v41 }
 0xc6f   : > { %3978 = vrsqrt.f32 %v3045_v42 }
 0xc75   : > { %v3977_v43 = vpop.eup %3976 }
 0xc76   : > { %v3048_v40 = vmul.f32 %v3977_v43, %v3032_v16 }
 0xc78   : > { %v3056_v47 = vmul.f32 %v3550_v45, %v3048_v40 }
 0xc79   : > { %v3979_v48 = vpop.eup %3978 }
 0xc7a   : > { %v3049_v49 = vmul.f32 %v3979_v48, %v3033_v26  ;;  %v3064_v51 = vadd.f32 %v3551_v46, %v3056_v47 }
 0xc7c   : > { %v3057_v52 = vmul.f32 %v3550_v45, %v3049_v49  ;;  %3810 = vmatprep.mubr.msk.f32.mxu0 %vm1142_vm5, %v3064_v51 }
 0xc7e   : > { %v3065_v53 = vadd.f32 %v3551_v46, %v3057_v52 }
 0xc80   : > { %3811 = vmatmul.mubr.msk.f32.vlgmr.msra.gmra.mrb[0].mxu0 %vm1142_vm5, %v3065_v53 }
 0xd53   : > { %v3812_v55 = vpop.f32.mrb[0].mxu0 }
 0xd54   : > { %v3149_v56 = vpop.f32.mrb[1].mxu0 }
 0xd55   : > { %v3150_v57 = vadd.f32 %v3552_v54, %v3149_v56 }
 0xd57   : > { %3158 = vst.msk [vmem:[#allocation5] sm:$0x1] %vm3157_vm2, %v3150_v57 }
 0xd58   : > { %3160 = vst.msk [vmem:[#allocation5 - $0x4] sm:$0x20] %vm3159_vm3, %v3150_v57 }
 0xd59 PF: > { %s4874_s7 = sld [smem:[#allocation10_spill]]  ;;  %s4064_s29 = smov [#allocation3]  }
 0xd5a   : > { %s3187_s21 = sshll.u32 %s4064_s29, 4  ;;  %s3188_s21 = int_to_ptr.vmem [resolvable:$true] %s3187_s21 }
 0xd5b   : > { %s3980_s26 = scalar_lea.vmem %s3188_s21, 256  ;;  %p3987_p10 = scmp.lt.s32.totalorder %s3188_s21, %s3188_s21 }
 0xd5c   : > { %p3981_p7 = scmp.ne.s32.totalorder %s3188_s21, %s3980_s26  ;;  %p3988_p11 = scmp.lt.s32.totalorder %s3980_s26, %s3980_s26 }
 0xd5e   : > { %p3989_p12 = por %p3988_p11, %p3987_p10 }
 0xd5f   : > { %p3901_p6 = scmp.eq.s32.totalorder %s4874_s7, 1 }
 0xd61   : > { %p3982_p8 = pnand %p3981_p7, %p3901_p6 }
 0xd63   : > { %p3983_p9 = pneg %p3982_p8 }
 0xd65   : > { %p3990_p13 = pnand %p3989_p12, %p3983_p9 }
 0xd67   : > { %3993 = shalt.err (!%p3990_p13)
}
 0xd68   : > { %s4875_s17 = sld [smem:[#allocation27_spill]] }
 0xd6e   : > { %s3994_s8 = scalar_lea.hbm %s4875_s17, 256 }
 0xd6f   : > { %p3995_p0 = scmp.ne.s32.totalorder %s4875_s17, %s3994_s8  ;;  %p4000_p3 = scmp.lt.u32.totalorder %s3994_s8, %s4875_s17 }
 0xd71   : > { %p3996_p1 = pnand %p3995_p0, %p3901_p6 }
 0xd73   : > { %p3997_p2 = pneg %p3996_p1 }
 0xd75   : > { %p4002_p4 = pnand %p4000_p3, %p3997_p2 }
 0xd77   : > { %4005 = shalt.err (!%p4002_p4)
}
 0xd78   : > { %s4065_s13 = smov 128   ;;  %s4066_s5 = smov [#allocation5]  }
 0xd79   : > { %3894 = dma.vmem_to_hbm [thread:$0]  (%p3901_p6), %s3188_s21, 256, %s4875_s17, [#allocation4], %s4065_s13, %s4065_s13, %s4061_s1  }
 0xd7a   : > { %s3213_s19 = sshll.u32 %s4066_s5, 4  ;;  %s3214_s19 = int_to_ptr.vmem [resolvable:$true] %s3213_s19 }
 0xd7b   : > { %s4006_s29 = scalar_lea.vmem %s3214_s19, 32  ;;  %p4013_p9 = scmp.lt.s32.totalorder %s3214_s19, %s3214_s19 }
 0xd7c   : > { %p4007_p5 = scmp.ne.s32.totalorder %s3214_s19, %s4006_s29  ;;  %p4014_p10 = scmp.lt.s32.totalorder %s4006_s29, %s4006_s29 }
 0xd7e   : > { %p4008_p7 = pnand %p4007_p5, %p3901_p6  ;;  %p4015_p11 = por %p4014_p10, %p4013_p9 }
 0xd80   : > { %p4009_p8 = pneg %p4008_p7 }
 0xd82   : > { %p4016_p12 = pnand %p4015_p11, %p4009_p8 }
 0xd84   : > { %4019 = shalt.err (!%p4016_p12)
}
 0xd85   : > { %s4876_s9 = sld [smem:[#allocation28_spill]] }
 0xd8b   : > { %s4020_s8 = scalar_lea.hbm %s4876_s9, 32 }
 0xd8c   : > { %p4021_p13 = scmp.ne.s32.totalorder %s4876_s9, %s4020_s8  ;;  %p4026_p2 = scmp.lt.u32.totalorder %s4020_s8, %s4876_s9 }
 0xd8e   : > { %p4022_p0 = pnand %p4021_p13, %p3901_p6 }
 0xd90   : > { %p4023_p1 = pneg %p4022_p0 }
 0xd92   : > { %p4028_p3 = pnand %p4026_p2, %p4023_p1 }
 0xd94   : > { %4031 = shalt.err (!%p4028_p3)
}
 0xd95   : > { %3896 = dma.vmem_to_hbm [thread:$0]  (%p3901_p6), %s3214_s19, 32, %s4876_s9, [#allocation6]  }
 0xd96   : > { %4037 = dma.done.wait (%p3901_p6), [#allocation4], 256  }
 0xd97   : > { %4039 = vsyncadd (%p3901_p6), [#allocation4], 4294967040 }
 0xd98   : > { %4041 = dma.done.wait (%p3901_p6), [#allocation6], 32  }
 0xd99   : > { %4043 = vsyncadd (%p3901_p6), [#allocation6], 4294967264 }
 0xd9a PF: > { %s4877_s13 = sld [smem:[#allocation9_spill]] }
 0xda0   : > { %s39_s27 = sadd.s32 1, %s4877_s13  }
 0xda1   : > { %p36_p4 = scmp.ge.s32.totalorder %s39_s27, 4  }
 0xda3   :  { %38 = sbr.rel (!%p36_p4) target bundleno = 21 (0x15), region = 235 }
 0xdaa   :  { %3262 = vsyncpa [#allocation4], 1 }
 0xdab   :  { %3264 = vsyncpa [#allocation4 + $0x1], 1 }
 0xdac   :  { %3265 = vsyncpa [#allocation6], 1 }

</bundles_post_ra>
